<compile_context>
chip_gen: v5e
topology: v5e:2x2
jax: 0.10.0
libtpu: 0.0.40
codegen_flags: <defaults>
</compile_context>

<pallas_src>
import functools
import numpy as np
import jax
import jax.numpy as jnp
from jax import lax
from jax.experimental import pallas as pl
from jax.experimental.pallas import tpu as pltpu

VMEM = pl.BlockSpec(memory_space=pltpu.MemorySpace.VMEM)
_LANE = 128   # lane width
_SUB = 16     # sublane granularity (bf16-friendly)


def _ceil_to(x, m):
    return ((x + m - 1) // m) * m


# ----------------------------- Pallas kernels -------------------------------

def _hidden_only_kernel(nodelevel, x_ref, w_ref, b_ref, mask_ref, o_ref):
    """Degenerate zero-edge path: hidden Linear (+ optional masked graph sum)."""
    h = jnp.dot(x_ref[...], w_ref[...],
                preferred_element_type=jnp.float32) + b_ref[...]
    if nodelevel:
        o_ref[...] = h
    else:
        o_ref[...] = jnp.sum(h * mask_ref[...], axis=0, keepdims=True)


def _fused_ggnn_kernel(layer_specs, needed_states, E, Np, Hp, nodelevel, *refs):
    """Whole GGNN forward in one kernel (node state resident in VMEM).

    refs (all whole-array VMEM, lane-padded):
      x (Np, Din) bf16, w_hid (Din, Hp) bf16, b_hid (1, Hp) f32,
      adj2d (E*Np, Np) bf16, mask (Np, 1) f32,
      per layer: wmsg (E, Hp, Hp) bf16, wim (Hp, 3Hp) bf16,
                 [wir_k (Hp, 3Hp) bf16 ...], whh (Hp, 3Hp) bf16,
                 gi_base (Np, 3Hp) f32, bhh (1, 3Hp) f32,
      out_ref last.
    """
    refs = list(refs)
    out_ref = refs.pop()
    it = iter(refs)
    x_ref = next(it)
    whid_ref = next(it)
    bhid_ref = next(it)
    adj_ref = next(it)
    mask_ref = next(it)

    # hidden_layer(cat([h, a], dim=1))
    state = jnp.dot(x_ref[...], whid_ref[...],
                    preferred_element_type=jnp.float32) + bhid_ref[...]
    saved = {0: state} if 0 in needed_states else {}

    for li, (num_timesteps, res_idx) in enumerate(layer_specs):
        wmsg = next(it)[...]                      # (E, Hp, Hp) bf16
        wim = next(it)[...]                       # (Hp, 3Hp)   bf16
        wirs = [next(it)[...] for _ in res_idx]   # (Hp, 3Hp)   bf16 each
        whh = next(it)[...]                       # (Hp, 3Hp)   bf16
        gi_const = next(it)[...]                  # (Np, 3Hp)   f32 (prefolded)
        bhh = next(it)[...]                       # (1, 3Hp)    f32

        # loop-invariant residual contribution (no in-kernel concat)
        for ridx, wir in zip(res_idx, wirs):
            gi_const = gi_const + jnp.dot(saved[ridx].astype(jnp.bfloat16), wir,
                                          preferred_element_type=jnp.float32)

        for _ in range(num_timesteps):            # static unroll, timesteps small
            sb = state.astype(jnp.bfloat16)
            # fused gather over all edge types: one (E*Np, Np) x (Np, Hp) dot
            gathered = jnp.dot(adj_ref[...], sb,
                               preferred_element_type=jnp.float32)
            g3 = gathered.reshape(E, Np, Hp).astype(jnp.bfloat16)
            # per-edge-type message weights: one batched dot over E
            msg3 = lax.dot_general(g3, wmsg, (((2,), (1,)), ((0,), (0,))),
                                   preferred_element_type=jnp.float32)
            msg = msg3[0]
            for e in range(1, E):
                msg = msg + msg3[e]
            # GRUCell, PyTorch gate order (r, z, n); 128-lane-aligned slices
            gi = jnp.dot(msg.astype(jnp.bfloat16), wim,
                         preferred_element_type=jnp.float32) + gi_const
            gh = jnp.dot(sb, whh, preferred_element_type=jnp.float32) + bhh
            r = jax.nn.sigmoid(gi[:, 0:Hp] + gh[:, 0:Hp])
            z = jax.nn.sigmoid(gi[:, Hp:2 * Hp] + gh[:, Hp:2 * Hp])
            n = jnp.tanh(gi[:, 2 * Hp:3 * Hp] + r * gh[:, 2 * Hp:3 * Hp])
            state = (1.0 - z) * n + z * state

        if (li + 1) in needed_states:
            saved[li + 1] = state

    if nodelevel:
        out_ref[...] = state
    else:
        out_ref[...] = jnp.sum(state * mask_ref[...], axis=0, keepdims=True)


# ------------------------- jitted packing + launch ---------------------------

def _pad2(x, rows, cols):
    return jnp.pad(x, ((0, rows - x.shape[0]), (0, cols - x.shape[1])))


def _gate_pad_cols(w, H, Hp):
    """(rows, 3H) -> (rows, 3Hp): pad each H-wide gate block to Hp lanes."""
    parts = [jnp.pad(w[:, g * H:(g + 1) * H], ((0, 0), (0, Hp - H)))
             for g in range(3)]
    return jnp.concatenate(parts, axis=1)


@functools.partial(jax.jit, static_argnames=("nodelevel", "dims"))
def _ggnn_hidden_only(params, init_repr, annotations, *, nodelevel, dims):
    N, H, Np, Hp, Din = dims
    x_cat = jnp.concatenate([init_repr, annotations], axis=1)
    x_pad = _pad2(x_cat, Np, Din).astype(jnp.bfloat16)
    w_hid = _pad2(params["hidden_w"].T, Din, Hp).astype(jnp.bfloat16)
    b_hid = _pad2(params["hidden_b"].reshape(1, H), 1, Hp).astype(jnp.float32)
    mask = (jnp.arange(Np) < N).astype(jnp.float32).reshape(Np, 1)
    out_shape = (Np, Hp) if nodelevel else (1, Hp)
    out = pl.pallas_call(
        functools.partial(_hidden_only_kernel, nodelevel),
        out_shape=jax.ShapeDtypeStruct(out_shape, jnp.float32),
        in_specs=[VMEM] * 4, out_specs=VMEM,
        compiler_params=pltpu.CompilerParams(vmem_limit_bytes=32 * 1024 * 1024),
    )(x_pad, w_hid, b_hid, mask)
    return out[:N, :H] if nodelevel else out[0, :H]


@functools.partial(jax.jit, static_argnames=("layer_specs", "nodelevel", "dims"))
def _ggnn_fused(params, init_repr, annotations, adj_dense, *,
                layer_specs, nodelevel, dims):
    N, H, E, Np, Hp, Din = dims
    f32, bf16 = jnp.float32, jnp.bfloat16

    x_cat = jnp.concatenate([init_repr, annotations], axis=1)        # (N, H+A)
    x_pad = _pad2(x_cat, Np, Din).astype(bf16)
    w_hid = _pad2(params["hidden_w"].T, Din, Hp).astype(bf16)
    b_hid = _pad2(params["hidden_b"].reshape(1, H), 1, Hp).astype(f32)

    adj_p = jnp.pad(adj_dense, ((0, 0), (0, Np - N), (0, Np - N)))   # (E,Np,Np)
    adj2d = adj_p.reshape(E * Np, Np).astype(bf16)
    in_deg = jnp.sum(adj_dense, axis=2).T                            # (N, E)
    mask = (jnp.arange(Np) < N).astype(f32).reshape(Np, 1)

    args = [x_pad, w_hid, b_hid, adj2d, mask]
    needed = frozenset(i for (_, res) in layer_specs for i in res)

    for layer_idx, (num_timesteps, res_idx) in enumerate(layer_specs):
        lp = params["layers"][layer_idx]
        n_res = len(res_idx)

        # per-edge-type message weights, transposed and padded: wmsg[e] = W_e^T
        wmsgT = jnp.swapaxes(lp["w_msg"], 1, 2)                      # (E, H, H)
        wmsg = jnp.pad(wmsgT, ((0, 0), (0, Hp - H), (0, Hp - H))).astype(bf16)

        wihT = lp["w_ih"].T                                          # (d_in, 3H)
        wim_raw = wihT[n_res * H:]                                   # (H, 3H) msg part
        wim = _pad2(_gate_pad_cols(wim_raw, H, Hp), Hp, 3 * Hp).astype(bf16)
        wirs = [_pad2(_gate_pad_cols(wihT[r * H:(r + 1) * H], H, Hp),
                      Hp, 3 * Hp).astype(bf16) for r in range(n_res)]
        whh = _pad2(_gate_pad_cols(lp["w_hh"].T, H, Hp), Hp, 3 * Hp).astype(bf16)

        # hoisted loop-invariant: (in_deg @ b_msg) @ Wi_m + b_ih
        bias_in = in_deg @ lp["b_msg"]                               # (N, H)
        gi_base = bias_in @ wim_raw + lp["b_ih"][None, :]            # (N, 3H)
        gi_base = _pad2(_gate_pad_cols(gi_base, H, Hp), Np, 3 * Hp).astype(f32)
        bhh = _gate_pad_cols(lp["b_hh"].reshape(1, 3 * H), H, Hp).astype(f32)

        args += [wmsg, wim, *wirs, whh, gi_base, bhh]

    kernel = functools.partial(_fused_ggnn_kernel, layer_specs, needed,
                               E, Np, Hp, nodelevel)
    out_shape = (Np, Hp) if nodelevel else (1, Hp)
    out = pl.pallas_call(
        kernel,
        out_shape=jax.ShapeDtypeStruct(out_shape, jnp.float32),
        in_specs=[VMEM] * len(args),
        out_specs=VMEM,
        compiler_params=pltpu.CompilerParams(vmem_limit_bytes=32 * 1024 * 1024),
    )(*args)
    return out[:N, :H] if nodelevel else out[0, :H]


# ------------------------------- public forward ------------------------------

def densify_adjacency(adj_lists, num_nodes):
    """Dense per-edge-type adjacency: adj[j, tgt, src] = edge multiplicity.
    Build once per graph and reuse (pass via `adj_dense=`) for repeated calls."""
    E = len(adj_lists)
    adj = np.zeros((E, num_nodes, num_nodes), dtype=np.float32)
    for j, edges in enumerate(adj_lists):
        if len(edges):
            e = np.asarray(edges, dtype=np.int64)
            np.add.at(adj, (j, e[:, 1], e[:, 0]), 1.0)
    return adj


def ggnn_forward(params, init_repr, annotations, adj_lists, layer_timesteps,
                 residual_connections, nodelevel=False, adj_dense=None):
    N = init_repr.shape[0]
    H = params["hidden_w"].shape[0]
    A = annotations.shape[1]
    E = len(adj_lists)
    Np = max(_SUB, _ceil_to(N, _SUB))
    Hp = max(_LANE, _ceil_to(H, _LANE))
    Din = max(_LANE, _ceil_to(H + A, _LANE))

    if sum(len(a) for a in adj_lists) == 0:
        return _ggnn_hidden_only(params, init_repr, annotations,
                                 nodelevel=nodelevel, dims=(N, H, Np, Hp, Din))

    if adj_dense is None:
        adj_dense = densify_adjacency(adj_lists, N)

    layer_specs = tuple(
        (int(t), tuple(int(i) for i in residual_connections.get(li, [])))
        for li, t in enumerate(layer_timesteps))

    return _ggnn_fused(params, init_repr, annotations,
                       jnp.asarray(adj_dense, jnp.float32),
                       layer_specs=layer_specs, nodelevel=nodelevel,
                       dims=(N, H, E, Np, Hp, Din))


# ------------------------- pure-JAX reference (check) ------------------------

def reference_forward(params, init_repr, annotations, adj_lists,
                      layer_timesteps, residual_connections, nodelevel=False):
    h = jnp.concatenate([init_repr, annotations], 1) @ params["hidden_w"].T \
        + params["hidden_b"]
    N, H = h.shape
    if sum(len(a) for a in adj_lists) == 0:
        return h if nodelevel else jnp.sum(h, axis=0)

    node_states = [h]
    for layer_idx, num_timesteps in enumerate(layer_timesteps):
        res_idx = residual_connections.get(layer_idx, [])
        res_states = [node_states[i] for i in res_idx]
        state = node_states[-1]
        lp = params["layers"][layer_idx]
        for _ in range(num_timesteps):
            msgs, tgts = [], []
            for j, edges in enumerate(adj_lists):
                if len(edges) == 0:
                    continue
                e = np.asarray(edges, dtype=np.int32)
                src, tgt = e[:, 0], e[:, 1]
                m = state[src] @ lp["w_msg"][j].T + lp["b_msg"][j]
                msgs.append(m)
                tgts.append(tgt)
            messages = jnp.concatenate(msgs, 0)
            targets = np.concatenate(tgts, 0)
            incoming = jnp.zeros((N, H), jnp.float32).at[targets].add(messages)
            xcat = jnp.concatenate(res_states + [incoming], axis=1)
            gi = xcat @ lp["w_ih"].T + lp["b_ih"]
            gh = state @ lp["w_hh"].T + lp["b_hh"]
            r = jax.nn.sigmoid(gi[:, :H] + gh[:, :H])
            z = jax.nn.sigmoid(gi[:, H:2 * H] + gh[:, H:2 * H])
            n = jnp.tanh(gi[:, 2 * H:] + r * gh[:, 2 * H:])
            state = (1.0 - z) * n + z * state
        node_states.append(state)
    return node_states[-1] if nodelevel else jnp.sum(node_states[-1], axis=0)


# ------------------------------ parameter init --------------------------------

def init_params(key, hidden_size, annotation_size, num_edge_types,
                layer_timesteps, residual_connections):
    H, A = hidden_size, annotation_size
    n_keys = 2 + 6 * len(layer_timesteps)
    keys = iter(jax.random.split(key, n_keys))

    def uni(k, shape, fan_in):
        bound = 1.0 / np.sqrt(fan_in)
        return jax.random.uniform(k, shape, jnp.float32, -bound, bound)

    params = {
        "hidden_w": uni(next(keys), (H, H + A), H + A),
        "hidden_b": uni(next(keys), (H,), H + A),
        "layers": [],
    }
    for layer_idx in range(len(layer_timesteps)):
        n_res = len(residual_connections.get(layer_idx, []))
        d_in = H * (1 + n_res)
        params["layers"].append({
            "w_msg": uni(next(keys), (num_edge_types, H, H), H),
            "b_msg": uni(next(keys), (num_edge_types, H), H),
            "w_ih": uni(next(keys), (3 * H, d_in), H),
            "w_hh": uni(next(keys), (3 * H, H), H),
            "b_ih": uni(next(keys), (3 * H,), H),
            "b_hh": uni(next(keys), (3 * H,), H),
        })
    return params


# ----------------------------------- main -------------------------------------

if __name__ == "__main__":
    N = 16            # number of graph nodes
    H = 32            # hidden_size
    A = 8             # annotation_size
    num_edge_types = 3
    layer_timesteps = [2, 2]
    residual_connections = {1: [0]}

    key = jax.random.PRNGKey(0)
    k_params, k_x, k_ann = jax.random.split(key, 3)

    params = init_params(k_params, H, A, num_edge_types,
                         layer_timesteps, residual_connections)

    init_repr = jax.random.normal(k_x, (N, H), jnp.float32)
    annotations = jax.random.normal(k_ann, (N, A), jnp.float32)

    # deterministic small edge lists (src, tgt); one empty edge type included
    adj_lists = [
        [(i, (i + 1) % N) for i in range(N)],                          # ring
        [(i, (i + 5) % N) for i in range(0, N, 2)] + [(3, 7), (3, 7)],  # + dup
        [],                                                            # empty
    ]

    # kernel uses bf16 MXU operands (f32 accumulation); compare against a
    # full-f32 reference with a correspondingly relaxed tolerance.
    TOL = 3e-2

    adj_dense = densify_adjacency(adj_lists, N)   # built once per graph, reused

    # --- graph-level output ---
    out = ggnn_forward(params, init_repr, annotations, adj_lists,
                       layer_timesteps, residual_connections,
                       nodelevel=False, adj_dense=adj_dense)
    out = jax.block_until_ready(out)
    with jax.default_matmul_precision("highest"):
        ref = reference_forward(params, init_repr, annotations, adj_lists,
                                layer_timesteps, residual_connections,
                                nodelevel=False)
    ref = jax.block_until_ready(ref)
    np.testing.assert_allclose(np.asarray(out), np.asarray(ref),
                               rtol=TOL, atol=TOL)

    # --- node-level output ---
    out_n = ggnn_forward(params, init_repr, annotations, adj_lists,
                         layer_timesteps, residual_connections,
                         nodelevel=True, adj_dense=adj_dense)
    out_n = jax.block_until_ready(out_n)
    with jax.default_matmul_precision("highest"):
        ref_n = reference_forward(params, init_repr, annotations, adj_lists,
                                  layer_timesteps, residual_connections,
                                  nodelevel=True)
    ref_n = jax.block_until_ready(ref_n)
    np.testing.assert_allclose(np.asarray(out_n), np.asarray(ref_n),
                               rtol=TOL, atol=TOL)

    # --- degenerate zero-edge path ---
    empty_lists = [[], [], []]
    out_e = ggnn_forward(params, init_repr, annotations, empty_lists,
                         layer_timesteps, residual_connections, nodelevel=False)
    out_e = jax.block_until_ready(out_e)
    with jax.default_matmul_precision("highest"):
        ref_e = reference_forward(params, init_repr, annotations, empty_lists,
                                  layer_timesteps, residual_connections,
                                  nodelevel=False)
    ref_e = jax.block_until_ready(ref_e)
    np.testing.assert_allclose(np.asarray(out_e), np.asarray(ref_e),
                               rtol=TOL, atol=TOL)

    print("KERNEL_OK")
</pallas_src>

<mosaic_0001>
module attributes {stable_mosaic.version = 11 : i64} {
  func.func @_fused_ggnn_kernel(%arg0: memref<16x128xbf16, #tpu.memory_space<vmem>>, %arg1: memref<128x128xbf16, #tpu.memory_space<vmem>>, %arg2: memref<1x128xf32, #tpu.memory_space<vmem>>, %arg3: memref<48x16xbf16, #tpu.memory_space<vmem>>, %arg4: memref<16x1xf32, #tpu.memory_space<vmem>>, %arg5: memref<3x128x128xbf16, #tpu.memory_space<vmem>>, %arg6: memref<128x384xbf16, #tpu.memory_space<vmem>>, %arg7: memref<128x384xbf16, #tpu.memory_space<vmem>>, %arg8: memref<16x384xf32, #tpu.memory_space<vmem>>, %arg9: memref<1x384xf32, #tpu.memory_space<vmem>>, %arg10: memref<3x128x128xbf16, #tpu.memory_space<vmem>>, %arg11: memref<128x384xbf16, #tpu.memory_space<vmem>>, %arg12: memref<128x384xbf16, #tpu.memory_space<vmem>>, %arg13: memref<128x384xbf16, #tpu.memory_space<vmem>>, %arg14: memref<16x384xf32, #tpu.memory_space<vmem>>, %arg15: memref<1x384xf32, #tpu.memory_space<vmem>>, %arg16: memref<1x128xf32, #tpu.memory_space<vmem>>) attributes {dimension_semantics = [], scalar_prefetch = 0 : i64, scratch_operands = 0 : i64, tpu.core_type = #tpu.core_type<tc>} {
    %c0 = arith.constant 0 : index
    %c0_0 = arith.constant 0 : index
    %0 = vector.load %arg0[%c0, %c0_0] : memref<16x128xbf16, #tpu.memory_space<vmem>>, vector<16x128xbf16>
    %c0_1 = arith.constant 0 : index
    %c0_2 = arith.constant 0 : index
    %1 = vector.load %arg1[%c0_1, %c0_2] : memref<128x128xbf16, #tpu.memory_space<vmem>>, vector<128x128xbf16>
    %cst = arith.constant dense<0.000000e+00> : vector<16x128xf32>
    %2 = tpu.matmul %0, %1, %cst {dimension_numbers = #tpu.dot_dimension_numbers<[1], [0], [0], [1], [0, 0, 1, 1], [], []>} : vector<16x128xbf16>, vector<128x128xbf16>, vector<16x128xf32> -> vector<16x128xf32>
    %c0_3 = arith.constant 0 : index
    %c0_4 = arith.constant 0 : index
    %3 = vector.load %arg2[%c0_3, %c0_4] : memref<1x128xf32, #tpu.memory_space<vmem>>, vector<1x128xf32>
    %4 = vector.broadcast %3 : vector<1x128xf32> to vector<16x128xf32>
    %5 = arith.addf %2, %4 : vector<16x128xf32>
    %c0_5 = arith.constant 0 : index
    %c0_6 = arith.constant 0 : index
    %c0_7 = arith.constant 0 : index
    %6 = vector.load %arg5[%c0_5, %c0_6, %c0_7] : memref<3x128x128xbf16, #tpu.memory_space<vmem>>, vector<3x128x128xbf16>
    %c0_8 = arith.constant 0 : index
    %c0_9 = arith.constant 0 : index
    %7 = vector.load %arg6[%c0_8, %c0_9] : memref<128x384xbf16, #tpu.memory_space<vmem>>, vector<128x384xbf16>
    %c0_10 = arith.constant 0 : index
    %c0_11 = arith.constant 0 : index
    %8 = vector.load %arg7[%c0_10, %c0_11] : memref<128x384xbf16, #tpu.memory_space<vmem>>, vector<128x384xbf16>
    %c0_12 = arith.constant 0 : index
    %c0_13 = arith.constant 0 : index
    %9 = vector.load %arg8[%c0_12, %c0_13] : memref<16x384xf32, #tpu.memory_space<vmem>>, vector<16x384xf32>
    %c0_14 = arith.constant 0 : index
    %c0_15 = arith.constant 0 : index
    %10 = vector.load %arg9[%c0_14, %c0_15] : memref<1x384xf32, #tpu.memory_space<vmem>>, vector<1x384xf32>
    %11 = arith.truncf %5 : vector<16x128xf32> to vector<16x128xbf16>
    %c0_16 = arith.constant 0 : index
    %c0_17 = arith.constant 0 : index
    %12 = vector.load %arg3[%c0_16, %c0_17] : memref<48x16xbf16, #tpu.memory_space<vmem>>, vector<48x16xbf16>
    %cst_18 = arith.constant dense<0.000000e+00> : vector<48x128xf32>
    %13 = tpu.matmul %12, %11, %cst_18 {dimension_numbers = #tpu.dot_dimension_numbers<[1], [0], [0], [1], [0, 0, 1, 1], [], []>} : vector<48x16xbf16>, vector<16x128xbf16>, vector<48x128xf32> -> vector<48x128xf32>
    %14 = vector.shape_cast %13 : vector<48x128xf32> to vector<3x16x128xf32>
    %15 = arith.truncf %14 : vector<3x16x128xf32> to vector<3x16x128xbf16>
    %cst_19 = arith.constant dense<0.000000e+00> : vector<3x16x128xf32>
    %16 = tpu.matmul %15, %6, %cst_19 {dimension_numbers = #tpu.dot_dimension_numbers<[2], [1], [1], [2], [0, 0, 0, 1, 1, 2], [0], [0]>} : vector<3x16x128xbf16>, vector<3x128x128xbf16>, vector<3x16x128xf32> -> vector<3x16x128xf32>
    %17 = vector.extract_strided_slice %16 {offsets = [0, 0, 0], sizes = [1, 16, 128], strides = [1, 1, 1]} : vector<3x16x128xf32> to vector<1x16x128xf32>
    %18 = vector.shape_cast %17 : vector<1x16x128xf32> to vector<16x128xf32>
    %19 = vector.extract_strided_slice %16 {offsets = [1, 0, 0], sizes = [1, 16, 128], strides = [1, 1, 1]} : vector<3x16x128xf32> to vector<1x16x128xf32>
    %20 = vector.shape_cast %19 : vector<1x16x128xf32> to vector<16x128xf32>
    %21 = arith.addf %18, %20 : vector<16x128xf32>
    %22 = vector.extract_strided_slice %16 {offsets = [2, 0, 0], sizes = [1, 16, 128], strides = [1, 1, 1]} : vector<3x16x128xf32> to vector<1x16x128xf32>
    %23 = vector.shape_cast %22 : vector<1x16x128xf32> to vector<16x128xf32>
    %24 = arith.addf %21, %23 : vector<16x128xf32>
    %25 = arith.truncf %24 : vector<16x128xf32> to vector<16x128xbf16>
    %cst_20 = arith.constant dense<0.000000e+00> : vector<16x384xf32>
    %26 = tpu.matmul %25, %7, %cst_20 {dimension_numbers = #tpu.dot_dimension_numbers<[1], [0], [0], [1], [0, 0, 1, 1], [], []>} : vector<16x128xbf16>, vector<128x384xbf16>, vector<16x384xf32> -> vector<16x384xf32>
    %27 = arith.addf %26, %9 : vector<16x384xf32>
    %cst_21 = arith.constant dense<0.000000e+00> : vector<16x384xf32>
    %28 = tpu.matmul %11, %8, %cst_21 {dimension_numbers = #tpu.dot_dimension_numbers<[1], [0], [0], [1], [0, 0, 1, 1], [], []>} : vector<16x128xbf16>, vector<128x384xbf16>, vector<16x384xf32> -> vector<16x384xf32>
    %29 = vector.broadcast %10 : vector<1x384xf32> to vector<16x384xf32>
    %30 = arith.addf %28, %29 : vector<16x384xf32>
    %31 = vector.extract_strided_slice %27 {offsets = [0, 0], sizes = [16, 128], strides = [1, 1]} : vector<16x384xf32> to vector<16x128xf32>
    %32 = vector.extract_strided_slice %30 {offsets = [0, 0], sizes = [16, 128], strides = [1, 1]} : vector<16x384xf32> to vector<16x128xf32>
    %33 = arith.addf %31, %32 : vector<16x128xf32>
    %34 = arith.negf %33 : vector<16x128xf32>
    %35 = math.exp %34 : vector<16x128xf32>
    %cst_22 = arith.constant 1.000000e+00 : f32
    %36 = vector.broadcast %cst_22 : f32 to vector<16x128xf32>
    %37 = arith.addf %36, %35 : vector<16x128xf32>
    %38 = arith.divf %36, %37 : vector<16x128xf32>
    %39 = vector.extract_strided_slice %27 {offsets = [0, 128], sizes = [16, 128], strides = [1, 1]} : vector<16x384xf32> to vector<16x128xf32>
    %40 = vector.extract_strided_slice %30 {offsets = [0, 128], sizes = [16, 128], strides = [1, 1]} : vector<16x384xf32> to vector<16x128xf32>
    %41 = arith.addf %39, %40 : vector<16x128xf32>
    %42 = arith.negf %41 : vector<16x128xf32>
    %43 = math.exp %42 : vector<16x128xf32>
    %cst_23 = arith.constant 1.000000e+00 : f32
    %44 = vector.broadcast %cst_23 : f32 to vector<16x128xf32>
    %45 = arith.addf %44, %43 : vector<16x128xf32>
    %46 = arith.divf %44, %45 : vector<16x128xf32>
    %47 = vector.extract_strided_slice %27 {offsets = [0, 256], sizes = [16, 128], strides = [1, 1]} : vector<16x384xf32> to vector<16x128xf32>
    %48 = vector.extract_strided_slice %30 {offsets = [0, 256], sizes = [16, 128], strides = [1, 1]} : vector<16x384xf32> to vector<16x128xf32>
    %49 = arith.mulf %38, %48 : vector<16x128xf32>
    %50 = arith.addf %47, %49 : vector<16x128xf32>
    %51 = math.tanh %50 : vector<16x128xf32>
    %cst_24 = arith.constant 1.000000e+00 : f32
    %52 = vector.broadcast %cst_24 : f32 to vector<16x128xf32>
    %53 = arith.subf %52, %46 : vector<16x128xf32>
    %54 = arith.mulf %53, %51 : vector<16x128xf32>
    %55 = arith.mulf %46, %5 : vector<16x128xf32>
    %56 = arith.addf %54, %55 : vector<16x128xf32>
    %57 = arith.truncf %56 : vector<16x128xf32> to vector<16x128xbf16>
    %c0_25 = arith.constant 0 : index
    %c0_26 = arith.constant 0 : index
    %58 = vector.load %arg3[%c0_25, %c0_26] : memref<48x16xbf16, #tpu.memory_space<vmem>>, vector<48x16xbf16>
    %cst_27 = arith.constant dense<0.000000e+00> : vector<48x128xf32>
    %59 = tpu.matmul %58, %57, %cst_27 {dimension_numbers = #tpu.dot_dimension_numbers<[1], [0], [0], [1], [0, 0, 1, 1], [], []>} : vector<48x16xbf16>, vector<16x128xbf16>, vector<48x128xf32> -> vector<48x128xf32>
    %60 = vector.shape_cast %59 : vector<48x128xf32> to vector<3x16x128xf32>
    %61 = arith.truncf %60 : vector<3x16x128xf32> to vector<3x16x128xbf16>
    %cst_28 = arith.constant dense<0.000000e+00> : vector<3x16x128xf32>
    %62 = tpu.matmul %61, %6, %cst_28 {dimension_numbers = #tpu.dot_dimension_numbers<[2], [1], [1], [2], [0, 0, 0, 1, 1, 2], [0], [0]>} : vector<3x16x128xbf16>, vector<3x128x128xbf16>, vector<3x16x128xf32> -> vector<3x16x128xf32>
    %63 = vector.extract_strided_slice %62 {offsets = [0, 0, 0], sizes = [1, 16, 128], strides = [1, 1, 1]} : vector<3x16x128xf32> to vector<1x16x128xf32>
    %64 = vector.shape_cast %63 : vector<1x16x128xf32> to vector<16x128xf32>
    %65 = vector.extract_strided_slice %62 {offsets = [1, 0, 0], sizes = [1, 16, 128], strides = [1, 1, 1]} : vector<3x16x128xf32> to vector<1x16x128xf32>
    %66 = vector.shape_cast %65 : vector<1x16x128xf32> to vector<16x128xf32>
    %67 = arith.addf %64, %66 : vector<16x128xf32>
    %68 = vector.extract_strided_slice %62 {offsets = [2, 0, 0], sizes = [1, 16, 128], strides = [1, 1, 1]} : vector<3x16x128xf32> to vector<1x16x128xf32>
    %69 = vector.shape_cast %68 : vector<1x16x128xf32> to vector<16x128xf32>
    %70 = arith.addf %67, %69 : vector<16x128xf32>
    %71 = arith.truncf %70 : vector<16x128xf32> to vector<16x128xbf16>
    %cst_29 = arith.constant dense<0.000000e+00> : vector<16x384xf32>
    %72 = tpu.matmul %71, %7, %cst_29 {dimension_numbers = #tpu.dot_dimension_numbers<[1], [0], [0], [1], [0, 0, 1, 1], [], []>} : vector<16x128xbf16>, vector<128x384xbf16>, vector<16x384xf32> -> vector<16x384xf32>
    %73 = arith.addf %72, %9 : vector<16x384xf32>
    %cst_30 = arith.constant dense<0.000000e+00> : vector<16x384xf32>
    %74 = tpu.matmul %57, %8, %cst_30 {dimension_numbers = #tpu.dot_dimension_numbers<[1], [0], [0], [1], [0, 0, 1, 1], [], []>} : vector<16x128xbf16>, vector<128x384xbf16>, vector<16x384xf32> -> vector<16x384xf32>
    %75 = vector.broadcast %10 : vector<1x384xf32> to vector<16x384xf32>
    %76 = arith.addf %74, %75 : vector<16x384xf32>
    %77 = vector.extract_strided_slice %73 {offsets = [0, 0], sizes = [16, 128], strides = [1, 1]} : vector<16x384xf32> to vector<16x128xf32>
    %78 = vector.extract_strided_slice %76 {offsets = [0, 0], sizes = [16, 128], strides = [1, 1]} : vector<16x384xf32> to vector<16x128xf32>
    %79 = arith.addf %77, %78 : vector<16x128xf32>
    %80 = arith.negf %79 : vector<16x128xf32>
    %81 = math.exp %80 : vector<16x128xf32>
    %cst_31 = arith.constant 1.000000e+00 : f32
    %82 = vector.broadcast %cst_31 : f32 to vector<16x128xf32>
    %83 = arith.addf %82, %81 : vector<16x128xf32>
    %84 = arith.divf %82, %83 : vector<16x128xf32>
    %85 = vector.extract_strided_slice %73 {offsets = [0, 128], sizes = [16, 128], strides = [1, 1]} : vector<16x384xf32> to vector<16x128xf32>
    %86 = vector.extract_strided_slice %76 {offsets = [0, 128], sizes = [16, 128], strides = [1, 1]} : vector<16x384xf32> to vector<16x128xf32>
    %87 = arith.addf %85, %86 : vector<16x128xf32>
    %88 = arith.negf %87 : vector<16x128xf32>
    %89 = math.exp %88 : vector<16x128xf32>
    %cst_32 = arith.constant 1.000000e+00 : f32
    %90 = vector.broadcast %cst_32 : f32 to vector<16x128xf32>
    %91 = arith.addf %90, %89 : vector<16x128xf32>
    %92 = arith.divf %90, %91 : vector<16x128xf32>
    %93 = vector.extract_strided_slice %73 {offsets = [0, 256], sizes = [16, 128], strides = [1, 1]} : vector<16x384xf32> to vector<16x128xf32>
    %94 = vector.extract_strided_slice %76 {offsets = [0, 256], sizes = [16, 128], strides = [1, 1]} : vector<16x384xf32> to vector<16x128xf32>
    %95 = arith.mulf %84, %94 : vector<16x128xf32>
    %96 = arith.addf %93, %95 : vector<16x128xf32>
    %97 = math.tanh %96 : vector<16x128xf32>
    %cst_33 = arith.constant 1.000000e+00 : f32
    %98 = vector.broadcast %cst_33 : f32 to vector<16x128xf32>
    %99 = arith.subf %98, %92 : vector<16x128xf32>
    %100 = arith.mulf %99, %97 : vector<16x128xf32>
    %101 = arith.mulf %92, %56 : vector<16x128xf32>
    %102 = arith.addf %100, %101 : vector<16x128xf32>
    %c0_34 = arith.constant 0 : index
    %c0_35 = arith.constant 0 : index
    %c0_36 = arith.constant 0 : index
    %103 = vector.load %arg10[%c0_34, %c0_35, %c0_36] : memref<3x128x128xbf16, #tpu.memory_space<vmem>>, vector<3x128x128xbf16>
    %c0_37 = arith.constant 0 : index
    %c0_38 = arith.constant 0 : index
    %104 = vector.load %arg11[%c0_37, %c0_38] : memref<128x384xbf16, #tpu.memory_space<vmem>>, vector<128x384xbf16>
    %c0_39 = arith.constant 0 : index
    %c0_40 = arith.constant 0 : index
    %105 = vector.load %arg12[%c0_39, %c0_40] : memref<128x384xbf16, #tpu.memory_space<vmem>>, vector<128x384xbf16>
    %c0_41 = arith.constant 0 : index
    %c0_42 = arith.constant 0 : index
    %106 = vector.load %arg13[%c0_41, %c0_42] : memref<128x384xbf16, #tpu.memory_space<vmem>>, vector<128x384xbf16>
    %c0_43 = arith.constant 0 : index
    %c0_44 = arith.constant 0 : index
    %107 = vector.load %arg14[%c0_43, %c0_44] : memref<16x384xf32, #tpu.memory_space<vmem>>, vector<16x384xf32>
    %c0_45 = arith.constant 0 : index
    %c0_46 = arith.constant 0 : index
    %108 = vector.load %arg15[%c0_45, %c0_46] : memref<1x384xf32, #tpu.memory_space<vmem>>, vector<1x384xf32>
    %109 = arith.truncf %5 : vector<16x128xf32> to vector<16x128xbf16>
    %cst_47 = arith.constant dense<0.000000e+00> : vector<16x384xf32>
    %110 = tpu.matmul %109, %105, %cst_47 {dimension_numbers = #tpu.dot_dimension_numbers<[1], [0], [0], [1], [0, 0, 1, 1], [], []>} : vector<16x128xbf16>, vector<128x384xbf16>, vector<16x384xf32> -> vector<16x384xf32>
    %111 = arith.addf %107, %110 : vector<16x384xf32>
    %112 = arith.truncf %102 : vector<16x128xf32> to vector<16x128xbf16>
    %c0_48 = arith.constant 0 : index
    %c0_49 = arith.constant 0 : index
    %113 = vector.load %arg3[%c0_48, %c0_49] : memref<48x16xbf16, #tpu.memory_space<vmem>>, vector<48x16xbf16>
    %cst_50 = arith.constant dense<0.000000e+00> : vector<48x128xf32>
    %114 = tpu.matmul %113, %112, %cst_50 {dimension_numbers = #tpu.dot_dimension_numbers<[1], [0], [0], [1], [0, 0, 1, 1], [], []>} : vector<48x16xbf16>, vector<16x128xbf16>, vector<48x128xf32> -> vector<48x128xf32>
    %115 = vector.shape_cast %114 : vector<48x128xf32> to vector<3x16x128xf32>
    %116 = arith.truncf %115 : vector<3x16x128xf32> to vector<3x16x128xbf16>
    %cst_51 = arith.constant dense<0.000000e+00> : vector<3x16x128xf32>
    %117 = tpu.matmul %116, %103, %cst_51 {dimension_numbers = #tpu.dot_dimension_numbers<[2], [1], [1], [2], [0, 0, 0, 1, 1, 2], [0], [0]>} : vector<3x16x128xbf16>, vector<3x128x128xbf16>, vector<3x16x128xf32> -> vector<3x16x128xf32>
    %118 = vector.extract_strided_slice %117 {offsets = [0, 0, 0], sizes = [1, 16, 128], strides = [1, 1, 1]} : vector<3x16x128xf32> to vector<1x16x128xf32>
    %119 = vector.shape_cast %118 : vector<1x16x128xf32> to vector<16x128xf32>
    %120 = vector.extract_strided_slice %117 {offsets = [1, 0, 0], sizes = [1, 16, 128], strides = [1, 1, 1]} : vector<3x16x128xf32> to vector<1x16x128xf32>
    %121 = vector.shape_cast %120 : vector<1x16x128xf32> to vector<16x128xf32>
    %122 = arith.addf %119, %121 : vector<16x128xf32>
    %123 = vector.extract_strided_slice %117 {offsets = [2, 0, 0], sizes = [1, 16, 128], strides = [1, 1, 1]} : vector<3x16x128xf32> to vector<1x16x128xf32>
    %124 = vector.shape_cast %123 : vector<1x16x128xf32> to vector<16x128xf32>
    %125 = arith.addf %122, %124 : vector<16x128xf32>
    %126 = arith.truncf %125 : vector<16x128xf32> to vector<16x128xbf16>
    %cst_52 = arith.constant dense<0.000000e+00> : vector<16x384xf32>
    %127 = tpu.matmul %126, %104, %cst_52 {dimension_numbers = #tpu.dot_dimension_numbers<[1], [0], [0], [1], [0, 0, 1, 1], [], []>} : vector<16x128xbf16>, vector<128x384xbf16>, vector<16x384xf32> -> vector<16x384xf32>
    %128 = arith.addf %127, %111 : vector<16x384xf32>
    %cst_53 = arith.constant dense<0.000000e+00> : vector<16x384xf32>
    %129 = tpu.matmul %112, %106, %cst_53 {dimension_numbers = #tpu.dot_dimension_numbers<[1], [0], [0], [1], [0, 0, 1, 1], [], []>} : vector<16x128xbf16>, vector<128x384xbf16>, vector<16x384xf32> -> vector<16x384xf32>
    %130 = vector.broadcast %108 : vector<1x384xf32> to vector<16x384xf32>
    %131 = arith.addf %129, %130 : vector<16x384xf32>
    %132 = vector.extract_strided_slice %128 {offsets = [0, 0], sizes = [16, 128], strides = [1, 1]} : vector<16x384xf32> to vector<16x128xf32>
    %133 = vector.extract_strided_slice %131 {offsets = [0, 0], sizes = [16, 128], strides = [1, 1]} : vector<16x384xf32> to vector<16x128xf32>
    %134 = arith.addf %132, %133 : vector<16x128xf32>
    %135 = arith.negf %134 : vector<16x128xf32>
    %136 = math.exp %135 : vector<16x128xf32>
    %cst_54 = arith.constant 1.000000e+00 : f32
    %137 = vector.broadcast %cst_54 : f32 to vector<16x128xf32>
    %138 = arith.addf %137, %136 : vector<16x128xf32>
    %139 = arith.divf %137, %138 : vector<16x128xf32>
    %140 = vector.extract_strided_slice %128 {offsets = [0, 128], sizes = [16, 128], strides = [1, 1]} : vector<16x384xf32> to vector<16x128xf32>
    %141 = vector.extract_strided_slice %131 {offsets = [0, 128], sizes = [16, 128], strides = [1, 1]} : vector<16x384xf32> to vector<16x128xf32>
    %142 = arith.addf %140, %141 : vector<16x128xf32>
    %143 = arith.negf %142 : vector<16x128xf32>
    %144 = math.exp %143 : vector<16x128xf32>
    %cst_55 = arith.constant 1.000000e+00 : f32
    %145 = vector.broadcast %cst_55 : f32 to vector<16x128xf32>
    %146 = arith.addf %145, %144 : vector<16x128xf32>
    %147 = arith.divf %145, %146 : vector<16x128xf32>
    %148 = vector.extract_strided_slice %128 {offsets = [0, 256], sizes = [16, 128], strides = [1, 1]} : vector<16x384xf32> to vector<16x128xf32>
    %149 = vector.extract_strided_slice %131 {offsets = [0, 256], sizes = [16, 128], strides = [1, 1]} : vector<16x384xf32> to vector<16x128xf32>
    %150 = arith.mulf %139, %149 : vector<16x128xf32>
    %151 = arith.addf %148, %150 : vector<16x128xf32>
    %152 = math.tanh %151 : vector<16x128xf32>
    %cst_56 = arith.constant 1.000000e+00 : f32
    %153 = vector.broadcast %cst_56 : f32 to vector<16x128xf32>
    %154 = arith.subf %153, %147 : vector<16x128xf32>
    %155 = arith.mulf %154, %152 : vector<16x128xf32>
    %156 = arith.mulf %147, %102 : vector<16x128xf32>
    %157 = arith.addf %155, %156 : vector<16x128xf32>
    %158 = arith.truncf %157 : vector<16x128xf32> to vector<16x128xbf16>
    %c0_57 = arith.constant 0 : index
    %c0_58 = arith.constant 0 : index
    %159 = vector.load %arg3[%c0_57, %c0_58] : memref<48x16xbf16, #tpu.memory_space<vmem>>, vector<48x16xbf16>
    %cst_59 = arith.constant dense<0.000000e+00> : vector<48x128xf32>
    %160 = tpu.matmul %159, %158, %cst_59 {dimension_numbers = #tpu.dot_dimension_numbers<[1], [0], [0], [1], [0, 0, 1, 1], [], []>} : vector<48x16xbf16>, vector<16x128xbf16>, vector<48x128xf32> -> vector<48x128xf32>
    %161 = vector.shape_cast %160 : vector<48x128xf32> to vector<3x16x128xf32>
    %162 = arith.truncf %161 : vector<3x16x128xf32> to vector<3x16x128xbf16>
    %cst_60 = arith.constant dense<0.000000e+00> : vector<3x16x128xf32>
    %163 = tpu.matmul %162, %103, %cst_60 {dimension_numbers = #tpu.dot_dimension_numbers<[2], [1], [1], [2], [0, 0, 0, 1, 1, 2], [0], [0]>} : vector<3x16x128xbf16>, vector<3x128x128xbf16>, vector<3x16x128xf32> -> vector<3x16x128xf32>
    %164 = vector.extract_strided_slice %163 {offsets = [0, 0, 0], sizes = [1, 16, 128], strides = [1, 1, 1]} : vector<3x16x128xf32> to vector<1x16x128xf32>
    %165 = vector.shape_cast %164 : vector<1x16x128xf32> to vector<16x128xf32>
    %166 = vector.extract_strided_slice %163 {offsets = [1, 0, 0], sizes = [1, 16, 128], strides = [1, 1, 1]} : vector<3x16x128xf32> to vector<1x16x128xf32>
    %167 = vector.shape_cast %166 : vector<1x16x128xf32> to vector<16x128xf32>
    %168 = arith.addf %165, %167 : vector<16x128xf32>
    %169 = vector.extract_strided_slice %163 {offsets = [2, 0, 0], sizes = [1, 16, 128], strides = [1, 1, 1]} : vector<3x16x128xf32> to vector<1x16x128xf32>
    %170 = vector.shape_cast %169 : vector<1x16x128xf32> to vector<16x128xf32>
    %171 = arith.addf %168, %170 : vector<16x128xf32>
    %172 = arith.truncf %171 : vector<16x128xf32> to vector<16x128xbf16>
    %cst_61 = arith.constant dense<0.000000e+00> : vector<16x384xf32>
    %173 = tpu.matmul %172, %104, %cst_61 {dimension_numbers = #tpu.dot_dimension_numbers<[1], [0], [0], [1], [0, 0, 1, 1], [], []>} : vector<16x128xbf16>, vector<128x384xbf16>, vector<16x384xf32> -> vector<16x384xf32>
    %174 = arith.addf %173, %111 : vector<16x384xf32>
    %cst_62 = arith.constant dense<0.000000e+00> : vector<16x384xf32>
    %175 = tpu.matmul %158, %106, %cst_62 {dimension_numbers = #tpu.dot_dimension_numbers<[1], [0], [0], [1], [0, 0, 1, 1], [], []>} : vector<16x128xbf16>, vector<128x384xbf16>, vector<16x384xf32> -> vector<16x384xf32>
    %176 = vector.broadcast %108 : vector<1x384xf32> to vector<16x384xf32>
    %177 = arith.addf %175, %176 : vector<16x384xf32>
    %178 = vector.extract_strided_slice %174 {offsets = [0, 0], sizes = [16, 128], strides = [1, 1]} : vector<16x384xf32> to vector<16x128xf32>
    %179 = vector.extract_strided_slice %177 {offsets = [0, 0], sizes = [16, 128], strides = [1, 1]} : vector<16x384xf32> to vector<16x128xf32>
    %180 = arith.addf %178, %179 : vector<16x128xf32>
    %181 = arith.negf %180 : vector<16x128xf32>
    %182 = math.exp %181 : vector<16x128xf32>
    %cst_63 = arith.constant 1.000000e+00 : f32
    %183 = vector.broadcast %cst_63 : f32 to vector<16x128xf32>
    %184 = arith.addf %183, %182 : vector<16x128xf32>
    %185 = arith.divf %183, %184 : vector<16x128xf32>
    %186 = vector.extract_strided_slice %174 {offsets = [0, 128], sizes = [16, 128], strides = [1, 1]} : vector<16x384xf32> to vector<16x128xf32>
    %187 = vector.extract_strided_slice %177 {offsets = [0, 128], sizes = [16, 128], strides = [1, 1]} : vector<16x384xf32> to vector<16x128xf32>
    %188 = arith.addf %186, %187 : vector<16x128xf32>
    %189 = arith.negf %188 : vector<16x128xf32>
    %190 = math.exp %189 : vector<16x128xf32>
    %cst_64 = arith.constant 1.000000e+00 : f32
    %191 = vector.broadcast %cst_64 : f32 to vector<16x128xf32>
    %192 = arith.addf %191, %190 : vector<16x128xf32>
    %193 = arith.divf %191, %192 : vector<16x128xf32>
    %194 = vector.extract_strided_slice %174 {offsets = [0, 256], sizes = [16, 128], strides = [1, 1]} : vector<16x384xf32> to vector<16x128xf32>
    %195 = vector.extract_strided_slice %177 {offsets = [0, 256], sizes = [16, 128], strides = [1, 1]} : vector<16x384xf32> to vector<16x128xf32>
    %196 = arith.mulf %185, %195 : vector<16x128xf32>
    %197 = arith.addf %194, %196 : vector<16x128xf32>
    %198 = math.tanh %197 : vector<16x128xf32>
    %cst_65 = arith.constant 1.000000e+00 : f32
    %199 = vector.broadcast %cst_65 : f32 to vector<16x128xf32>
    %200 = arith.subf %199, %193 : vector<16x128xf32>
    %201 = arith.mulf %200, %198 : vector<16x128xf32>
    %202 = arith.mulf %193, %157 : vector<16x128xf32>
    %203 = arith.addf %201, %202 : vector<16x128xf32>
    %c0_66 = arith.constant 0 : index
    %c0_67 = arith.constant 0 : index
    %204 = vector.load %arg4[%c0_66, %c0_67] : memref<16x1xf32, #tpu.memory_space<vmem>>, vector<16x1xf32>
    %205 = vector.broadcast %204 : vector<16x1xf32> to vector<16x128xf32>
    %206 = arith.mulf %203, %205 : vector<16x128xf32>
    %cst_68 = arith.constant dense<0.000000e+00> : vector<128xf32>
    %207 = vector.multi_reduction <add>, %206, %cst_68 [0] : vector<16x128xf32> to vector<128xf32>
    %208 = vector.shape_cast %207 : vector<128xf32> to vector<1x128xf32>
    %c0_69 = arith.constant 0 : index
    %c0_70 = arith.constant 0 : index
    %209 = vector.load %arg16[%c0_69, %c0_70] : memref<1x128xf32, #tpu.memory_space<vmem>>, vector<1x128xf32>
    tpu.vector_store %arg16[%c0_69, %c0_70], %208 {strides = array<i32>} : memref<1x128xf32, #tpu.memory_space<vmem>>, vector<1x128xf32>,
    return
  }
}

</mosaic_0001>

<bundles_post_ra>
// kernel: _ggnn_fused.1
= control target key start
LH: loop header
LB: loop body
LE: loop exit
PB: predicated region body
PF: predicated region fallthrough
CT: control target
= control target key end

     0   :  { %vm285_vm0 = vcmask 130048   ;;  %s5346_s1 = inlined_call_operand.vmem [shape: bf16[128,128], index: 1, kind: input, shape index: {}]   ;;  %s5347_s2 = inlined_call_operand.vmem [shape: f32[1,128], index: 2, kind: input, shape index: {}]   ;;  %s5348_s0 = inlined_call_operand.vmem [shape: bf16[16,128], index: 0, kind: input, shape index: {}]   ;;  %s5349_s3 = inlined_call_operand.vmem [shape: bf16[48,16], index: 3, kind: input, shape index: {}]   ;;  %s5350_s5 = inlined_call_operand.vmem [shape: bf16[3,128,128], index: 5, kind: input, shape index: {}]   ;;  %s5351_s7 = inlined_call_operand.vmem [shape: bf16[128,384], index: 7, kind: input, shape index: {}]   ;;  %s5352_s6 = inlined_call_operand.vmem [shape: bf16[128,384], index: 6, kind: input, shape index: {}]   ;;  %s5353_s9 = inlined_call_operand.vmem [shape: f32[1,384], index: 9, kind: input, shape index: {}]   ;;  %s5354_s8 = inlined_call_operand.vmem [shape: f32[16,384], index: 8, kind: input, shape index: {}]   ;;  %s5355_s12 = inlined_call_operand.vmem [shape: bf16[128,384], index: 12, kind: input, shape index: {}]   ;;  %s5356_s10 = inlined_call_operand.vmem [shape: bf16[3,128,128], index: 10, kind: input, shape index: {}]   ;;  %s5357_s13 = inlined_call_operand.vmem [shape: bf16[128,384], index: 13, kind: input, shape index: {}]   ;;  %s5358_s11 = inlined_call_operand.vmem [shape: bf16[128,384], index: 11, kind: input, shape index: {}]   ;;  %s5359_s15 = inlined_call_operand.vmem [shape: f32[1,384], index: 15, kind: input, shape index: {}]   ;;  %s5360_s14 = inlined_call_operand.vmem [shape: f32[16,384], index: 14, kind: input, shape index: {}]   ;;  %s5361_s4 = inlined_call_operand.vmem [shape: f32[16,1], index: 4, kind: input, shape index: {}]   ;;  %s5362_s16 = inlined_call_operand.vmem [shape: f32[1,128], index: 16, kind: output, shape index: {}]  }
   0x1   :  { %5392 = sst [smem:[#allocation19_spill]] %s5346_s1  ;;  %v3305_v8 = vld [vmem:[%s5348_s0] sm:$0xff]  ;;  %v3706_v16 = vld [vmem:[%s5350_s5 + $0x38] sm:$0xff]  ;;  %v3712_v17 = vld [vmem:[%s5350_s5 + $0x30] sm:$0xff] }
   0x2   :  { %s5393_s23 = sld [smem:[#allocation19_spill]]  ;;  %v3487_v10 = vld [vmem:[%s5347_s2] ss:$0 sm:$0xff]  ;;  %379 = vmatpush.bf16.msra.mxu2 %v3706_v16  ;;  %v3718_v18 = vld [vmem:[%s5350_s5 + $0x28] sm:$0xff]  ;;  %v3737_v21 = vld [vmem:[%s5349_s3 + $0x10] sm:$0xff] }
   0x3   :  { %v3698_v15 = vld [vmem:[%s5349_s3] sm:$0xff]  ;;  %v3729_v20 = vld [vmem:[%s5349_s3 + $0x8] sm:$0xff]  ;;  %v3744_v22 = vld [vmem:[%s5350_s5 + $0x18] sm:$0xff] }
   0x4   :  { %v3724_v19 = vld [vmem:[%s5350_s5 + $0x20] sm:$0xff]  ;;  %v3749_v23 = vld [vmem:[%s5350_s5 + $0x78] sm:$0xff]  ;;  %v3761_v25 = vld [vmem:[%s5350_s5 + $0x10] sm:$0xff] }
   0x5   :  { %447 = vmatpush.bf16.msra.mxu3 %v3749_v23  ;;  %v3756_v24 = vld [vmem:[%s5350_s5 + $0xb8] sm:$0xff]  ;;  %v3766_v26 = vld [vmem:[%s5350_s5 + $0x70] sm:$0xff]  ;;  %v3779_v28 = vld [vmem:[%s5350_s5 + $0x8] sm:$0xff] }
   0x6   :  { %380 = vmatpush.bf16.msra.mxu2 %v3712_v17  ;;  %v3772_v27 = vld [vmem:[%s5350_s5 + $0xb0] sm:$0xff]  ;;  %v3784_v29 = vld [vmem:[%s5350_s5 + $0x68] sm:$0xff]  ;;  %v3797_v31 = vld [vmem:[%s5350_s5] sm:$0xff] }
   0x7   :  { %v3792_v30 = vld [vmem:[%s5350_s5 + $0xa8] sm:$0xff]  ;;  %v3802_v32 = vld [vmem:[%s5350_s5 + $0x60] sm:$0xff]  ;;  %v3815_v34 = vld [vmem:[%s5350_s5 + $0x58] sm:$0xff] }
   0x8   :  { %v3313_v0 = vld [vmem:[%s5393_s23 + $0x38] sm:$0xff]  ;;  %v3312_v1 = vld [vmem:[%s5393_s23 + $0x30] sm:$0xff]  ;;  %v3311_v2 = vld [vmem:[%s5393_s23 + $0x28] sm:$0xff] }
   0x9   :  { %130 = vmatpush.bf16.msra.mxu0 %v3313_v0  ;;  %v3310_v3 = vld [vmem:[%s5393_s23 + $0x20] sm:$0xff]  ;;  %v3309_v4 = vld [vmem:[%s5393_s23 + $0x18] sm:$0xff]  ;;  %v3308_v5 = vld [vmem:[%s5393_s23 + $0x10] sm:$0xff]  ;;  %448 = vmatpush.bf16.msra.mxu3 %v3766_v26 }
   0xa   :  { %v3307_v6 = vld [vmem:[%s5393_s23 + $0x8] sm:$0xff]  ;;  %v3306_v7 = vld [vmem:[%s5393_s23] sm:$0xff]  ;;  %381 = vmatpush.bf16.msra.mxu2 %v3718_v18  ;;  %v3822_v35 = vld [vmem:[%s5350_s5 + $0x98] sm:$0xff] }
   0xb   :  { %v3810_v33 = vld [vmem:[%s5350_s5 + $0xa0] sm:$0xff]  ;;  %v3827_v36 = vld [vmem:[%s5350_s5 + $0x50] sm:$0xff]  ;;  %v3839_v38 = vld [vmem:[%s5350_s5 + $0x48] sm:$0xff] }
   0xc   :  { %v3833_v37 = vld [vmem:[%s5350_s5 + $0x90] sm:$0xff]  ;;  %v3846_v39 = vld [vmem:[%s5350_s5 + $0x88] sm:$0xff]  ;;  %v3851_v40 = vld [vmem:[%s5350_s5 + $0x40] sm:$0xff] }
   0xd   :  { %131 = vmatpush.bf16.msra.mxu0 %v3312_v1  ;;  %449 = vmatpush.bf16.msra.mxu3 %v3784_v29  ;;  %v3858_v41 = vld [vmem:[%s5350_s5 + $0x80] sm:$0xff]  ;;  %v2886_v42 = vld [vmem:[%s5351_s7 + $0xa8] sm:$0xf]  ;;  %v3384_v43 = vld [vmem:[%s5351_s7 + $0xb0] sm:$0xf0] }
   0xe   :  { %382 = vmatpush.bf16.msra.mxu2 %v3724_v19  ;;  %v3866_v44 = vor.u32 %v3384_v43, %v2886_v42  ;;  %v2874_v46 = vld [vmem:[%s5351_s7 + $0x90] sm:$0xf]  ;;  %v3381_v47 = vld [vmem:[%s5351_s7 + $0x98] sm:$0xf0]  ;;  %v2862_v49 = vld [vmem:[%s5351_s7 + $0x78] sm:$0xf] }
   0xf   :  { %v3876_v48 = vor.u32 %v3381_v47, %v2874_v46  ;;  %v3378_v50 = vld [vmem:[%s5351_s7 + $0x80] sm:$0xf0]  ;;  %v2850_v55 = vld [vmem:[%s5351_s7 + $0x60] sm:$0xf]  ;;  %v3375_v56 = vld [vmem:[%s5351_s7 + $0x68] sm:$0xf0] }
  0x10   :  { %v3885_v51 = vor.u32 %v3378_v50, %v2862_v49  ;;  %v3894_v57 = vor.u32 %v3375_v56, %v2850_v55  ;;  %v2838_v61 = vld [vmem:[%s5351_s7 + $0x48] sm:$0xf]  ;;  %v3372_v62 = vld [vmem:[%s5351_s7 + $0x50] sm:$0xf0]  ;;  %v2826_v0 = vld [vmem:[%s5351_s7 + $0x30] sm:$0xf] }
  0x11   :  { %132 = vmatpush.bf16.msra.mxu0 %v3311_v2  ;;  %450 = vmatpush.bf16.msra.mxu3 %v3802_v32  ;;  %v3903_v63 = vor.u32 %v3372_v62, %v2838_v61  ;;  %v3369_v1 = vld [vmem:[%s5351_s7 + $0x38] sm:$0xf0]  ;;  %v2790_v47 = vld [vmem:[%s5352_s6 + $0xa8] sm:$0xf]  ;;  %v3360_v49 = vld [vmem:[%s5352_s6 + $0xb0] sm:$0xf0] }
  0x12   :  { %383 = vmatpush.bf16.msra.mxu2 %v3744_v22  ;;  %v3359_v50 = vld [vmem:[%s5352_s6 + $0xac] sm:$0xf]  ;;  %v2778_v55 = vld [vmem:[%s5352_s6 + $0x90] sm:$0xf]  ;;  %v3357_v56 = vld [vmem:[%s5352_s6 + $0x98] sm:$0xf0] }
  0x13   :  { %v3960_v61 = vor.u32 %v3357_v56, %v2778_v55  ;;  %v2786_v55 = vld [vmem:[%s5352_s6 + $0x98] sm:$0xf]  ;;  %v3358_v56 = vld [vmem:[%s5352_s6 + $0xa0] sm:$0xf0] }
  0x15   :  { %133 = vmatpush.bf16.msra.mxu0 %v3310_v3  ;;  %451 = vmatpush.bf16.msra.mxu3 %v3815_v34  ;;  %v3912_v3 = vor.u32 %v3369_v1, %v2826_v0 }
  0x16   :  { %384 = vmatpush.bf16.msra.mxu2 %v3761_v25 }
  0x19   :  { %134 = vmatpush.bf16.msra.mxu0 %v3309_v4  ;;  %452 = vmatpush.bf16.msra.mxu3 %v3827_v36  ;;  %v2814_v4 = vld [vmem:[%s5351_s7 + $0x18] sm:$0xf] }
  0x1a   :  { %385 = vmatpush.bf16.msra.mxu2 %v3779_v28 }
  0x1d   :  { %135 = vmatpush.bf16.msra.mxu0 %v3308_v5  ;;  %453 = vmatpush.bf16.msra.mxu3 %v3839_v38  ;;  %v3366_v5 = vld [vmem:[%s5351_s7 + $0x20] sm:$0xf0] }
  0x1e   :  { %386 = vmatpush.bf16.msra.mxu2 %v3797_v31 }
  0x21   :  { %136 = vmatpush.bf16.msra.mxu0 %v3307_v6  ;;  %454 = vmatpush.bf16.msra.mxu3 %v3851_v40  ;;  %v3921_v6 = vor.u32 %v3366_v5, %v2814_v4 }
  0x25   :  { %137 = vmatpush.bf16.msra.mxu0 %v3306_v7  ;;  %v2802_v7 = vld [vmem:[%s5351_s7] sm:$0xf] }
  0x28   :  { %138 = vmatmul.bf16.vlgmr.msra.gmra.mxu0 %v3305_v8  ;;  %v3363_v8 = vld [vmem:[%s5351_s7 + $0x8] sm:$0xf0] }
  0xa5   :  { %v139_v9 = vpop.f32.mrf.mxu0 }
  0xa6   :  { %v3687_v12 = vadd.f32 %v3487_v10, %v139_v9 }
  0xad   :  { %v141_v11 = vpop.f32.mrf.mxu0 }
  0xae   :  { %v3689_v13 = vadd.f32 %v3487_v10, %v141_v11  ;;  %v3930_v11 = vor.u32 %v3363_v8, %v2802_v7  ;;  %v3350_v8 = vld [vmem:[%s5352_s6 + $0x64] sm:$0xf] }
  0xb0   :  { %v3693_v14 = vpack.c.bf16 %v3689_v13, %v3687_v12 }
  0xb2   :  { %302 = vmatpush.bf16.msra.mxu1 %v3693_v14 }
  0xb5   :  { %2605 = vmatmul.msk.bf16.vlgmr.msra.gmra.mxu1 %vm285_vm0, %v3698_v15 }
  0xb6   :  { %515 = vmatpush.bf16.msrb.mxu1 %v3756_v24 }
  0xba   :  { %516 = vmatpush.bf16.msrb.mxu1 %v3772_v27 }
  0xbe   :  { %517 = vmatpush.bf16.msrb.mxu1 %v3792_v30 }
  0xc2   :  { %518 = vmatpush.bf16.msrb.mxu1 %v3810_v33 }
  0xc5   :  { %2606 = vmatmul.msk.bf16.gmra.mxu1 %vm285_vm0, %v3729_v20 }
  0xc6   :  { %519 = vmatpush.bf16.msrb.mxu1 %v3822_v35 }
  0xca   :  { %520 = vmatpush.bf16.msrb.mxu1 %v3833_v37 }
  0xce   :  { %521 = vmatpush.bf16.msrb.mxu1 %v3846_v39 }
  0xd2   :  { %522 = vmatpush.bf16.msrb.mxu1 %v3858_v41 }
  0xd5   :  { %2607 = vmatmul.msk.bf16.gmra.mxu1 %vm285_vm0, %v3737_v21 }
  0xd6   :  { %839 = vmatpush.bf16.msra.mxu1 %v3866_v44 }
  0xda   :  { %840 = vmatpush.bf16.msra.mxu1 %v3876_v48 }
  0xde   :  { %841 = vmatpush.bf16.msra.mxu1 %v3885_v51 }
  0xe2   :  { %842 = vmatpush.bf16.msra.mxu1 %v3894_v57 }
  0xe6   :  { %843 = vmatpush.bf16.msra.mxu1 %v3903_v63 }
  0xea   :  { %844 = vmatpush.bf16.msra.mxu1 %v3912_v3 }
  0xee   :  { %845 = vmatpush.bf16.msra.mxu1 %v3921_v6 }
  0xf2   :  { %846 = vmatpush.bf16.msra.mxu1 %v3930_v11 }
 0x132   :  { %v304_v45 = vpop.f32.mrf.mxu1 }
 0x133   :  { %v319_v52 = vpack.c.bf16 %v304_v45, %v304_v45 }
 0x135   :  { %v327_v58 = vunpack.c.l.b16 %v319_v52 }
 0x13a   :  { %v306_v53 = vpop.f32.mrf.mxu1 }
 0x13b   :  { %v320_v54 = vpack.c.bf16 %v306_v53, %v306_v53  ;;  %v3942_v53 = vor.u32 %v3360_v49, %v2790_v47  ;;  %v2742_v47 = vld [vmem:[%s5352_s6 + $0x48] sm:$0xf]  ;;  %v3348_v49 = vld [vmem:[%s5352_s6 + $0x50] sm:$0xf0] }
 0x13d   :  { %v328_v59 = vunpack.c.l.b16 %v320_v54  ;;  %v2792_v54 = vld [vmem:[%s5352_s6 + $0xb4] sm:$0xf0]  ;;  %662 = vmatpush.bf16.msrb.mxu0 %v3942_v53 }
 0x13f   :  { %v329_v60 = vpack.c.b16 %v328_v59, %v327_v58  ;;  %v2795_v58 = vor.u32 %v3359_v50, %v2792_v54  ;;  %v3356_v59 = vld [vmem:[%s5352_s6 + $0x94] sm:$0xf]  ;;  %v3347_v50 = vld [vmem:[%s5352_s6 + $0x4c] sm:$0xf]  ;;  %v2744_v54 = vld [vmem:[%s5352_s6 + $0x54] sm:$0xf0] }
 0x141   :  { %387 = vmatmul.bf16.vlgmr.msra.gmra.mxu2 %v329_v60  ;;  %v2780_v60 = vld [vmem:[%s5352_s6 + $0x9c] sm:$0xf0]  ;;  %663 = vmatpush.bf16.msrb.mxu0 %v3960_v61 }
 0x142   :  { %v309_v2 = vpop.f32.mrf.mxu1  ;;  %676 = vmatpush.bf16.msrb.mxu2 %v2795_v58  ;;  %v2783_v62 = vor.u32 %v3356_v59, %v2780_v60  ;;  %v4031_v59 = vor.u32 %v3358_v56, %v2786_v55  ;;  %v2730_v60 = vld [vmem:[%s5352_s6 + $0x30] sm:$0xf]  ;;  %v3349_v56 = vld [vmem:[%s5352_s6 + $0x58] sm:$0xf0] }
 0x143   :  { %v321_v9 = vpack.c.bf16 %v309_v2, %v309_v2  ;;  %v2750_v55 = vld [vmem:[%s5352_s6 + $0x50] sm:$0xf] }
 0x145   :  { %v395_v43 = vunpack.c.l.b16 %v321_v9  ;;  %v2756_v9 = vld [vmem:[%s5352_s6 + $0x6c] sm:$0xf0] }
 0x146   :  { %677 = vmatpush.bf16.msrb.mxu2 %v2783_v62 }
 0x14a   :  { %v311_v10 = vpop.f32.mrf.mxu1 }
 0x14b   :  { %v322_v42 = vpack.c.bf16 %v311_v10, %v311_v10 }
 0x14d   :  { %v396_v45 = vunpack.c.l.b16 %v322_v42  ;;  %v2759_v42 = vor.u32 %v3350_v8, %v2756_v9  ;;  %v3352_v8 = vld [vmem:[%s5352_s6 + $0x70] sm:$0xf0] }
 0x14f   :  { %v397_v46 = vpack.c.b16 %v396_v45, %v395_v43  ;;  %v2798_v43 = vld [vmem:[%s5352_s6 + $0xb0] sm:$0xf]  ;;  %v3361_v45 = vld [vmem:[%s5352_s6 + $0xb8] sm:$0xf0] }
 0x151   :  { %455 = vmatmul.bf16.vlgmr.msra.gmra.mxu3 %v397_v46  ;;  %v4007_v46 = vor.u32 %v3361_v45, %v2798_v43  ;;  %v2706_v43 = vld [vmem:[%s5352_s6] sm:$0xf]  ;;  %v3339_v45 = vld [vmem:[%s5352_s6 + $0x8] sm:$0xf0] }
 0x152   :  { %v314_v52 = vpop.f32.mrf.mxu1 }
 0x153   :  { %v323_v0 = vpack.c.bf16 %v314_v52, %v314_v52  ;;  %690 = vmatpush.bf16.msrb.mxu3 %v4007_v46  ;;  %v4020_v52 = vor.u32 %v3348_v49, %v2742_v47  ;;  %v3338_v47 = vld [vmem:[%s5352_s6 + $0x4] sm:$0xf]  ;;  %v4091_v49 = vor.u32 %v3339_v45, %v2706_v43  ;;  %v2726_v45 = vld [vmem:[%s5352_s6 + $0x20] sm:$0xf] }
 0x155   :  { %v463_v4 = vunpack.c.l.b16 %v323_v0  ;;  %v3344_v0 = vld [vmem:[%s5352_s6 + $0x34] sm:$0xf] }
 0x157   :  { %691 = vmatpush.bf16.msrb.mxu3 %v4031_v59 }
 0x15a   :  { %v316_v1 = vpop.f32.mrf.mxu1 }
 0x15b   :  { %v324_v2 = vpack.c.bf16 %v316_v1, %v316_v1 }
 0x15d   :  { %v464_v5 = vunpack.c.l.b16 %v324_v2  ;;  %v2732_v2 = vld [vmem:[%s5352_s6 + $0x3c] sm:$0xf0] }
 0x15f   :  { %v465_v7 = vpack.c.b16 %v464_v5, %v463_v4  ;;  %v2735_v4 = vor.u32 %v3344_v0, %v2732_v2  ;;  %v2774_v5 = vld [vmem:[%s5352_s6 + $0x80] sm:$0xf]  ;;  %v2894_v0 = vld [vmem:[%s5351_s7 + $0xb0] sm:$0xf]  ;;  %v3385_v2 = vld [vmem:[%s5351_s7 + $0xb8] sm:$0xf0] }
 0x161   :  { %523 = vmatmul.bf16.vlgmr.msrb.gmra.mxu1 %v465_v7  ;;  %v3355_v7 = vld [vmem:[%s5352_s6 + $0x88] sm:$0xf0] }
 0x162   :  { %1012 = vmatpush.bf16.msrb.mxu1 %v3706_v16  ;;  %v2766_v16 = vld [vmem:[%s5352_s6 + $0x78] sm:$0xf] }
 0x166   :  { %1013 = vmatpush.bf16.msrb.mxu1 %v3712_v17  ;;  %v3354_v17 = vld [vmem:[%s5352_s6 + $0x80] sm:$0xf0] }
 0x16a   :  { %1014 = vmatpush.bf16.msrb.mxu1 %v3718_v18  ;;  %v3353_v18 = vld [vmem:[%s5352_s6 + $0x7c] sm:$0xf] }
 0x16e   :  { %1015 = vmatpush.bf16.msrb.mxu1 %v3724_v19  ;;  %v3981_v19 = vor.u32 %v3354_v17, %v2766_v16  ;;  %v4055_v16 = vor.u32 %v3355_v7, %v2774_v5  ;;  %v2718_v17 = vld [vmem:[%s5352_s6 + $0x18] sm:$0xf]  ;;  %v4120_v5 = vor.u32 %v3385_v2, %v2894_v0  ;;  %v2714_v2 = vld [vmem:[%s5352_s6 + $0x8] sm:$0xf] }
 0x16f   :  { %v2738_v7 = vld [vmem:[%s5352_s6 + $0x38] sm:$0xf] }
 0x170   :  { %664 = vmatpush.bf16.msrb.mxu0 %v3981_v19  ;;  %692 = vmatpush.bf16.msrb.mxu3 %v4055_v16  ;;  %5394 = vst [vmem:[#allocation2_spill] sm:$0xff] %v4120_v5 }
 0x171   :  { %847 = vmatmul.bf16.vlgmr.msra.gmra.mxu1 %v3693_v14 }
 0x172   :  { %1016 = vmatpush.bf16.msrb.mxu1 %v3744_v22  ;;  %v2768_v22 = vld [vmem:[%s5352_s6 + $0x84] sm:$0xf0] }
 0x176   :  { %1017 = vmatpush.bf16.msrb.mxu1 %v3761_v25  ;;  %v2754_v25 = vld [vmem:[%s5352_s6 + $0x60] sm:$0xf] }
 0x17a   :  { %1018 = vmatpush.bf16.msrb.mxu1 %v3779_v28  ;;  %v3351_v28 = vld [vmem:[%s5352_s6 + $0x68] sm:$0xf0] }
 0x17b   :  { %v3999_v10 = vor.u32 %v3351_v28, %v2754_v25  ;;  %v2720_v28 = vld [vmem:[%s5352_s6 + $0x24] sm:$0xf0] }
 0x17d   :  { %665 = vmatpush.bf16.msrb.mxu0 %v3999_v10 }
 0x17e   :  { %1019 = vmatpush.bf16.msrb.mxu1 %v3797_v31  ;;  %v2771_v31 = vor.u32 %v3353_v18, %v2768_v22  ;;  %v3342_v18 = vld [vmem:[%s5352_s6 + $0x20] sm:$0xf0]  ;;  %v3341_v22 = vld [vmem:[%s5352_s6 + $0x1c] sm:$0xf] }
 0x17f   :  { %v4068_v25 = vor.u32 %v3342_v18, %v2718_v17  ;;  %v2723_v9 = vor.u32 %v3341_v22, %v2720_v28  ;;  %v3346_v17 = vld [vmem:[%s5352_s6 + $0x40] sm:$0xf0]  ;;  %v3380_v18 = vld [vmem:[%s5351_s7 + $0x94] sm:$0xf]  ;;  %v2876_v28 = vld [vmem:[%s5351_s7 + $0x9c] sm:$0xf0] }
 0x180   :  { %678 = vmatpush.bf16.msrb.mxu2 %v2771_v31  ;;  %v4134_v22 = vor.u32 %v3346_v17, %v2738_v7  ;;  %v3340_v7 = vld [vmem:[%s5352_s6 + $0x10] sm:$0xf0]  ;;  %v3374_v17 = vld [vmem:[%s5351_s7 + $0x64] sm:$0xf] }
 0x181   :  { %666 = vmatpush.bf16.msrb.mxu0 %v4020_v52 }
 0x182   :  { %1085 = vmatpush.bf16.msra.mxu1 %v2795_v58  ;;  %v2747_v58 = vor.u32 %v3347_v50, %v2744_v54  ;;  %v2708_v50 = vld [vmem:[%s5352_s6 + $0xc] sm:$0xf0] }
 0x183   :  { %v2711_v54 = vor.u32 %v3338_v47, %v2708_v50  ;;  %v3343_v47 = vld [vmem:[%s5352_s6 + $0x28] sm:$0xf0]  ;;  %v3377_v50 = vld [vmem:[%s5351_s7 + $0x7c] sm:$0xf] }
 0x184   :  { %679 = vmatpush.bf16.msrb.mxu2 %v2759_v42 }
 0x186   :  { %1086 = vmatpush.bf16.msra.mxu1 %v2783_v62  ;;  %v3345_v62 = vld [vmem:[%s5352_s6 + $0x38] sm:$0xf0] }
 0x187   :  { %v4043_v1 = vor.u32 %v3345_v62, %v2730_v60  ;;  %v4106_v60 = vor.u32 %v3349_v56, %v2750_v55  ;;  %v2888_v62 = vld [vmem:[%s5351_s7 + $0xb4] sm:$0xf0]  ;;  %v4159_v55 = vor.u32 %v3343_v47, %v2726_v45  ;;  %v2870_v56 = vld [vmem:[%s5351_s7 + $0x80] sm:$0xf] }
 0x188   :  { %680 = vmatpush.bf16.msrb.mxu2 %v2747_v58 }
 0x189   :  { %667 = vmatpush.bf16.msrb.mxu0 %v4043_v1 }
 0x18a   :  { %1087 = vmatpush.bf16.msra.mxu1 %v2771_v31  ;;  %v2762_v31 = vld [vmem:[%s5352_s6 + $0x68] sm:$0xf] }
 0x18c   :  { %681 = vmatpush.bf16.msrb.mxu2 %v2735_v4 }
 0x18d   :  { %668 = vmatpush.bf16.msrb.mxu0 %v4068_v25 }
 0x18e   :  { %1088 = vmatpush.bf16.msra.mxu1 %v2759_v42  ;;  %v4079_v42 = vor.u32 %v3352_v8, %v2762_v31  ;;  %v2882_v31 = vld [vmem:[%s5351_s7 + $0x98] sm:$0xf]  ;;  %v3382_v8 = vld [vmem:[%s5351_s7 + $0xa0] sm:$0xf0] }
 0x18f   :  { %v4147_v43 = vor.u32 %v3382_v8, %v2882_v31  ;;  %v2858_v31 = vld [vmem:[%s5351_s7 + $0x68] sm:$0xf]  ;;  %v3376_v8 = vld [vmem:[%s5351_s7 + $0x70] sm:$0xf0] }
 0x190   :  { %682 = vmatpush.bf16.msrb.mxu2 %v2723_v9  ;;  %693 = vmatpush.bf16.msrb.mxu3 %v4079_v42  ;;  %v4201_v47 = vor.u32 %v3376_v8, %v2858_v31  ;;  %v2834_v31 = vld [vmem:[%s5351_s7 + $0x38] sm:$0xf] }
 0x191   :  { %669 = vmatpush.bf16.msrb.mxu0 %v4091_v49  ;;  %5395 = vst [vmem:[#allocation3_spill] sm:$0xff] %v4147_v43 }
 0x192   :  { %1089 = vmatpush.bf16.msra.mxu1 %v2747_v58  ;;  %v3383_v58 = vld [vmem:[%s5351_s7 + $0xac] sm:$0xf]  ;;  %5398 = vst [vmem:[#allocation6_spill] sm:$0xff] %v4201_v47 }
 0x194   :  { %683 = vmatpush.bf16.msrb.mxu2 %v2711_v54  ;;  %694 = vmatpush.bf16.msrb.mxu3 %v4106_v60 }
 0x196   :  { %1090 = vmatpush.bf16.msra.mxu1 %v2735_v4  ;;  %v4118_v4 = vor.u32 %v3383_v58, %v2888_v62  ;;  %v3379_v58 = vld [vmem:[%s5351_s7 + $0x88] sm:$0xf0] }
 0x197   :  { %v4174_v0 = vor.u32 %v3379_v58, %v2870_v56  ;;  %v2846_v56 = vld [vmem:[%s5351_s7 + $0x50] sm:$0xf] }
 0x198   :  { %853 = vmatpush.bf16.msra.mxu0 %v4118_v4  ;;  %867 = vmatpush.bf16.msra.mxu2 %v4120_v5 }
 0x199   :  { %695 = vmatpush.bf16.msrb.mxu3 %v4134_v22  ;;  %5396 = vst [vmem:[#allocation4_spill] sm:$0xff] %v4174_v0 }
 0x19a   :  { %1091 = vmatpush.bf16.msra.mxu1 %v2723_v9  ;;  %v4145_v9 = vor.u32 %v3380_v18, %v2876_v28  ;;  %v4188_v18 = vor.u32 %v3340_v7, %v2714_v2  ;;  %v2852_v28 = vld [vmem:[%s5351_s7 + $0x6c] sm:$0xf0]  ;;  %v3373_v2 = vld [vmem:[%s5351_s7 + $0x58] sm:$0xf0] }
 0x19b   :  { %v4199_v45 = vor.u32 %v3374_v17, %v2852_v28  ;;  %v4220_v7 = vor.u32 %v3373_v2, %v2846_v56  ;;  %v3368_v17 = vld [vmem:[%s5351_s7 + $0x34] sm:$0xf]  ;;  %v2828_v28 = vld [vmem:[%s5351_s7 + $0x3c] sm:$0xf0]  ;;  %v2816_v56 = vld [vmem:[%s5351_s7 + $0x24] sm:$0xf0] }
 0x19c   :  { %854 = vmatpush.bf16.msra.mxu0 %v4145_v9  ;;  %868 = vmatpush.bf16.msra.mxu2 %v4147_v43  ;;  %v4233_v8 = vor.u32 %v3368_v17, %v2828_v28  ;;  %v3367_v17 = vld [vmem:[%s5351_s7 + $0x28] sm:$0xf0] }
 0x19d   :  { %696 = vmatpush.bf16.msrb.mxu3 %v4159_v55  ;;  %5397 = vst [vmem:[#allocation5_spill] sm:$0xff] %v4199_v45 }
 0x19e   :  { %1092 = vmatpush.bf16.msra.mxu1 %v2711_v54  ;;  %v2864_v54 = vld [vmem:[%s5351_s7 + $0x84] sm:$0xf0]  ;;  %5400 = vst [vmem:[#allocation8_spill] sm:$0xff] %v4220_v7 }
 0x19f   :  { %v4172_v62 = vor.u32 %v3377_v50, %v2864_v54  ;;  %v3371_v50 = vld [vmem:[%s5351_s7 + $0x4c] sm:$0xf]  ;;  %v2840_v54 = vld [vmem:[%s5351_s7 + $0x54] sm:$0xf0]  ;;  %5401 = vst [vmem:[#allocation9_spill] sm:$0xff] %v4233_v8 }
 0x1a0   :  { %869 = vmatpush.bf16.msra.mxu2 %v4174_v0  ;;  %v4215_v58 = vor.u32 %v3371_v50, %v2840_v54  ;;  %v3370_v50 = vld [vmem:[%s5351_s7 + $0x40] sm:$0xf0]  ;;  %v3365_v54 = vld [vmem:[%s5351_s7 + $0x1c] sm:$0xf] }
 0x1a1   :  { %855 = vmatpush.bf16.msra.mxu0 %v4172_v62  ;;  %697 = vmatpush.bf16.msrb.mxu3 %v4188_v18  ;;  %v4244_v2 = vor.u32 %v3370_v50, %v2834_v31  ;;  %v4253_v28 = vor.u32 %v3365_v54, %v2816_v56  ;;  %v3362_v31 = vld [vmem:[%s5351_s7 + $0x4] sm:$0xf]  ;;  %v2804_v50 = vld [vmem:[%s5351_s7 + $0xc] sm:$0xf0]  ;;  %v2810_v54 = vld [vmem:[%s5351_s7 + $0x8] sm:$0xf] }
 0x1a2   :  { %5399 = vst [vmem:[#allocation7_spill] sm:$0xff] %v4215_v58  ;;  %v4269_v56 = vor.u32 %v3362_v31, %v2804_v50 }
 0x1a3   :  { %5402 = vst [vmem:[#allocation10_spill] sm:$0xff] %v4244_v2 }
 0x1a4   :  { %870 = vmatpush.bf16.msra.mxu2 %v4201_v47  ;;  %5403 = vst [vmem:[#allocation11_spill] sm:$0xff] %v4253_v28 }
 0x1a5   :  { %856 = vmatpush.bf16.msra.mxu0 %v4199_v45 }
 0x1a8   :  { %871 = vmatpush.bf16.msra.mxu2 %v4220_v7  ;;  %v2822_v7 = vld [vmem:[%s5351_s7 + $0x20] sm:$0xf] }
 0x1a9   :  { %857 = vmatpush.bf16.msra.mxu0 %v4215_v58  ;;  %v4256_v47 = vor.u32 %v3367_v17, %v2822_v7  ;;  %v3364_v7 = vld [vmem:[%s5351_s7 + $0x10] sm:$0xf0] }
 0x1ab   :  { %5404 = vst [vmem:[#allocation12_spill] sm:$0xff] %v4256_v47 }
 0x1ac   :  { %872 = vmatpush.bf16.msra.mxu2 %v4244_v2 }
 0x1ad   :  { %858 = vmatpush.bf16.msra.mxu0 %v4233_v8 }
 0x1b0   :  { %873 = vmatpush.bf16.msra.mxu2 %v4256_v47  ;;  %v4274_v47 = vor.u32 %v3364_v7, %v2810_v54 }
 0x1b1   :  { %859 = vmatpush.bf16.msra.mxu0 %v4253_v28 }
 0x1b4   :  { %874 = vmatpush.bf16.msra.mxu2 %v4274_v47 }
 0x1b5   :  { %860 = vmatpush.bf16.msra.mxu0 %v4269_v56 }
 0x1c4   :  { %v388_v2 = vpop.f32.mrf.mxu2 }
 0x1cc   :  { %v390_v5 = vpop.f32.mrf.mxu2 }
 0x1d4   :  { %v456_v17 = vpop.f32.mrf.mxu3 }
 0x1d5   :  { %v529_v28 = vadd.f32 %v456_v17, %v388_v2 }
 0x1dc   :  { %v458_v43 = vpop.f32.mrf.mxu3 }
 0x1dd   :  { %v530_v8 = vadd.f32 %v458_v43, %v390_v5 }
 0x1de   :  { %v524_v0 = vpop.f32.mrf.mxu1 }
 0x1df   :  { %v531_v31 = vadd.f32 %v529_v28, %v524_v0 }
 0x1e6   :  { %v526_v58 = vpop.f32.mrf.mxu1 }
 0x1e7   :  { %v532_v50 = vadd.f32 %v530_v8, %v526_v58 }
 0x1e9   :  { %v533_v45 = vpack.c.bf16 %v532_v50, %v531_v31 }
 0x1eb   :  { %670 = vmatmul.bf16.vlgmr.msrb.gmra.mxu0 %v533_v45  ;;  %684 = vmatmul.bf16.vlgmr.msrb.gmra.mxu2 %v533_v45 }
 0x1ec   :  { %698 = vmatmul.bf16.vlgmr.msrb.gmra.mxu3 %v533_v45  ;;  %1052 = vmatpush.bf16.msrb.mxu2 %v3756_v24 }
 0x1ed   :  { %1032 = vmatpush.bf16.msrb.mxu0 %v3749_v23  ;;  %v262_v23 = vld [vmem:[%s5353_s9] sm:$0x7] }
 0x1ee   :  { %v848_v24 = vpop.f32.mrf.mxu1 }
 0x1f0   :  { %1053 = vmatpush.bf16.msrb.mxu2 %v3772_v27  ;;  %v4320_v27 = vld [vmem:[%s5354_s8] sm:$0xff] }
 0x1f1   :  { %1033 = vmatpush.bf16.msrb.mxu0 %v3766_v26  ;;  %v4315_v26 = vperm.slane %v262_v23, 0 }
 0x1f4   :  { %1054 = vmatpush.bf16.msrb.mxu2 %v3792_v30  ;;  %v849_v30 = vadd.f32 %v848_v24, %v4315_v26 }
 0x1f5   :  { %1034 = vmatpush.bf16.msrb.mxu0 %v3784_v29 }
 0x1f8   :  { %1055 = vmatpush.bf16.msrb.mxu2 %v3810_v33 }
 0x1f9   :  { %1035 = vmatpush.bf16.msrb.mxu0 %v3802_v32 }
 0x1fb   :  { %861 = vmatmul.bf16.vlgmr.msra.gmra.mxu0 %v3693_v14  ;;  %875 = vmatmul.bf16.vlgmr.msra.gmra.mxu2 %v3693_v14 }
 0x1fc   :  { %1056 = vmatpush.bf16.msrb.mxu2 %v3822_v35  ;;  %v850_v35 = vpop.f32.mrf.mxu1 }
 0x1fd   :  { %1036 = vmatpush.bf16.msrb.mxu0 %v3815_v34 }
 0x200   :  { %1057 = vmatpush.bf16.msrb.mxu2 %v3833_v37 }
 0x201   :  { %1037 = vmatpush.bf16.msrb.mxu0 %v3827_v36  ;;  %v4327_v36 = vld [vmem:[%s5354_s8 + $0x18] sm:$0xff] }
 0x204   :  { %1058 = vmatpush.bf16.msrb.mxu2 %v3846_v39 }
 0x205   :  { %1038 = vmatpush.bf16.msrb.mxu0 %v3839_v38  ;;  %v851_v38 = vadd.f32 %v850_v35, %v4315_v26 }
 0x208   :  { %1059 = vmatpush.bf16.msrb.mxu2 %v3858_v41 }
 0x209   :  { %1039 = vmatpush.bf16.msrb.mxu0 %v3851_v40 }
 0x20c   :  { %1113 = vmatpush.bf16.msra.mxu2 %v3866_v44 }
 0x20d   :  { %1099 = vmatpush.bf16.msra.mxu0 %v4007_v46 }
 0x210   :  { %1114 = vmatpush.bf16.msra.mxu2 %v3876_v48 }
 0x211   :  { %1100 = vmatpush.bf16.msra.mxu0 %v4031_v59 }
 0x214   :  { %1115 = vmatpush.bf16.msra.mxu2 %v3885_v51  ;;  %v4331_v51 = vperm.slane %v262_v23, 1 }
 0x215   :  { %1101 = vmatpush.bf16.msra.mxu0 %v4055_v16 }
 0x218   :  { %1116 = vmatpush.bf16.msra.mxu2 %v3894_v57 }
 0x219   :  { %1102 = vmatpush.bf16.msra.mxu0 %v4079_v42 }
 0x21c   :  { %1117 = vmatpush.bf16.msra.mxu2 %v3903_v63  ;;  %v4336_v63 = vld [vmem:[%s5354_s8 + $0x8] sm:$0xff] }
 0x21d   :  { %1103 = vmatpush.bf16.msra.mxu0 %v4106_v60 }
 0x220   :  { %1118 = vmatpush.bf16.msra.mxu2 %v3912_v3 }
 0x221   :  { %1104 = vmatpush.bf16.msra.mxu0 %v4134_v22  ;;  %v4343_v22 = vld [vmem:[%s5354_s8 + $0x20] sm:$0xff] }
 0x224   :  { %1119 = vmatpush.bf16.msra.mxu2 %v3921_v6 }
 0x225   :  { %1105 = vmatpush.bf16.msra.mxu0 %v4159_v55 }
 0x228   :  { %1120 = vmatpush.bf16.msra.mxu2 %v3930_v11 }
 0x229   :  { %1106 = vmatpush.bf16.msra.mxu0 %v4188_v18 }
 0x268   :  { %v671_v29 = vpop.f32.mrf.mxu0 }
 0x269   :  { %v672_v32 = vadd.f32 %v671_v29, %v4320_v27 }
 0x26b   :  { %v881_v33 = vadd.f32 %v849_v30, %v672_v32 }
 0x26d   :  { %v2896_v34 = vmul.f32 -1.442695, %v881_v33 }
 0x26e   :  { %v685_v39 = vpop.f32.mrf.mxu2 }
 0x26f   :  { %3488 = vpow2.f32 %v2896_v34  ;;  %v686_v6 = vadd.f32 %v685_v39, %v4336_v63  ;;  %v699_v24 = vpop.f32.mrf.mxu3 }
 0x270   :  { %v673_v37 = vpop.f32.mrf.mxu0 }
 0x271   :  { %v674_v40 = vadd.f32 %v673_v37, %v4327_v36  ;;  %v4351_v37 = vperm.slane %v262_v23, 2 }
 0x273   :  { %v882_v41 = vadd.f32 %v851_v38, %v674_v40 }
 0x275   :  { %v3489_v44 = vpop.eup %3488  ;;  %v2897_v48 = vmul.f32 -1.442695, %v882_v41 }
 0x276   :  { %v889_v57 = vadd.f32 1.0, %v3489_v44  ;;  %v687_v46 = vpop.f32.mrf.mxu2 }
 0x277   :  { %3490 = vpow2.f32 %v2897_v48  ;;  %v688_v0 = vadd.f32 %v687_v46, %v4343_v22 }
 0x278   :  { %3492 = vrcp.f32 %v889_v57  ;;  %v862_v3 = vpop.f32.mrf.mxu0  ;;  %v902_v29 = vand.u32 2147483648, %v889_v57  ;;  %vm896_vm2 = vweird.f32 %v889_v57  ;;  %v900_v32 = vand.u32 2147483647, %v889_v57 }
 0x279   :  { %v863_v11 = vadd.f32 %v862_v3, %v4331_v51 }
 0x27a   :  { %v903_v41 = vor.u32 1.1754944e-38, %v902_v29  ;;  %vm901_vm6 = vcmp.eq.f32.partialorder %v900_v32, 8.507059e+37 }
 0x27b   :  { %v921_v59 = vadd.f32 %v863_v11, %v686_v6 }
 0x27d   :  { %v3491_v16 = vpop.eup %3490  ;;  %v2898_v42 = vmul.f32 -1.442695, %v921_v59 }
 0x27e   :  { %v3493_v60 = vpop.eup %3492  ;;  %v890_v5 = vadd.f32 1.0, %v3491_v16  ;;  %v876_v28 = vpop.f32.mrf.mxu2  ;;  %v4359_v16 = vld [vmem:[%s5354_s8 + $0x10] sm:$0xff] }
 0x27f   :  { %3494 = vpow2.f32 %v2898_v42  ;;  %v892_v43 = vmul.f32 %v3493_v60, %v889_v57  ;;  %vm897_vm1 = vweird.f32 %v3493_v60  ;;  %v877_v23 = vadd.f32 %v876_v28, %v4351_v37 }
 0x280   :  { %3496 = vrcp.f32 %v890_v5  ;;  %v864_v55 = vpop.f32.mrf.mxu0  ;;  %vm4347_vm3 = vmor %vm896_vm2, %vm897_vm1  ;;  %v917_v35 = vand.u32 2147483648, %v890_v5  ;;  %v915_v39 = vand.u32 2147483647, %v890_v5  ;;  %vm911_vm5 = vweird.f32 %v890_v5 }
 0x281   :  { %v893_v18 = vsub.f32 1.0, %v892_v43  ;;  %v865_v45 = vadd.f32 %v864_v55, %v4331_v51  ;;  %v4365_v55 = vld [vmem:[%s5354_s8 + $0x28] sm:$0xff] }
 0x282   :  { %v918_v59 = vor.u32 1.1754944e-38, %v917_v35  ;;  %vm916_vm8 = vcmp.eq.f32.partialorder %v915_v39, 8.507059e+37 }
 0x283   :  { %v922_v58 = vadd.f32 %v865_v45, %v688_v0  ;;  %v894_v8 = vmul.f32 %v3493_v60, %v893_v18  ;;  %v701_v0 = vpop.f32.mrf.mxu3  ;;  %v700_v45 = vadd.f32 %v699_v24, %v4359_v16 }
 0x285   :  { %v3495_v2 = vpop.eup %3494  ;;  %v2899_v54 = vmul.f32 -1.442695, %v922_v58  ;;  %v895_v50 = vadd.f32 %v3493_v60, %v894_v8 }
 0x286   :  { %v3497_v7 = vpop.eup %3496  ;;  %v929_v17 = vadd.f32 1.0, %v3495_v2  ;;  %v878_v11 = vpop.f32.mrf.mxu2 }
 0x287   :  { %3498 = vpow2.f32 %v2899_v54  ;;  %v907_v31 = vmul.f32 %v3497_v7, %v890_v5  ;;  %vm912_vm4 = vweird.f32 %v3497_v7  ;;  %v899_v38 = vsel %vm4347_vm3, %v3493_v60, %v895_v50 }
 0x288   :  { %3500 = vrcp.f32 %v929_v17  ;;  %vm913_vm7 = vmor %vm911_vm5, %vm912_vm4  ;;  %v904_v6 = vsel %vm901_vm6, %v903_v41, %v899_v38  ;;  %v879_v43 = vadd.f32 %v878_v11, %v4351_v37  ;;  %v942_v8 = vand.u32 2147483648, %v929_v17 }
 0x289   :  { %v908_v30 = vsub.f32 1.0, %v907_v31  ;;  %v961_v5 = vmul.f32 %v904_v6, %v877_v23  ;;  %vm936_vm10 = vweird.f32 %v929_v17  ;;  %v940_v28 = vand.u32 2147483647, %v929_v17 }
 0x28a   :  { %v943_v32 = vor.u32 1.1754944e-38, %v942_v8  ;;  %v5415_v8 = vld [vmem:[#allocation8_spill] sm:$0xff] }
 0x28b   :  { %v909_v34 = vmul.f32 %v3497_v7, %v908_v30  ;;  %v963_v31 = vadd.f32 %v961_v5, %v700_v45  ;;  %vm941_vm12 = vcmp.eq.f32.partialorder %v940_v28, 8.507059e+37  ;;  %v5413_v5 = vld [vmem:[#allocation4_spill] sm:$0xff] }
 0x28d   :  { %v3499_v40 = vpop.eup %3498  ;;  %v910_v44 = vadd.f32 %v3497_v7, %v909_v34 }
 0x28e   :  { %v3501_v48 = vpop.eup %3500  ;;  %v930_v57 = vadd.f32 1.0, %v3499_v40 }
 0x28f   :  { %v932_v3 = vmul.f32 %v3501_v48, %v929_v17  ;;  %v914_v46 = vsel %vm913_vm7, %v3497_v7, %v910_v44  ;;  %vm937_vm9 = vweird.f32 %v3501_v48  ;;  %v702_v7 = vadd.f32 %v701_v0, %v4365_v55 }
 0x290   :  { %3502 = vrcp.f32 %v930_v57  ;;  %v919_v60 = vsel %vm916_vm8, %v918_v59, %v914_v46  ;;  %vm938_vm11 = vmor %vm936_vm10, %vm937_vm9  ;;  %v957_v35 = vand.u32 2147483648, %v930_v57  ;;  %v955_v38 = vand.u32 2147483647, %v930_v57 }
 0x291   :  { %v933_v42 = vsub.f32 1.0, %v932_v3  ;;  %v962_v58 = vmul.f32 %v919_v60, %v879_v43  ;;  %3504 = vtanh.f32 %v963_v31  ;;  %vm951_vm14 = vweird.f32 %v930_v57 }
 0x292   :  { %v958_v40 = vor.u32 1.1754944e-38, %v957_v35  ;;  %vm956_vm1 = vcmp.eq.f32.partialorder %v955_v38, 8.507059e+37  ;;  %v3455_v35 = vld [vmem:[%s5355_s12 + $0x94] sm:$0xf] }
 0x293   :  { %v934_v18 = vmul.f32 %v3501_v48, %v933_v42  ;;  %v964_v30 = vadd.f32 %v962_v58, %v702_v7  ;;  %v5417_v7 = vld [vmem:[#allocation12_spill] sm:$0xff] }
 0x295   :  { %v935_v2 = vadd.f32 %v3501_v48, %v934_v18  ;;  %3506 = vtanh.f32 %v964_v30  ;;  %v5414_v18 = vld [vmem:[#allocation6_spill] sm:$0xff] }
 0x296   :  { %v3503_v54 = vpop.eup %3502 }
 0x297   :  { %v947_v50 = vmul.f32 %v3503_v54, %v930_v57  ;;  %v939_v29 = vsel %vm938_vm11, %v3501_v48, %v935_v2  ;;  %vm952_vm13 = vweird.f32 %v3503_v54  ;;  %v3505_v44 = vpop.eup %3504  ;;  %v5416_v2 = vld [vmem:[#allocation10_spill] sm:$0xff] }
 0x298   :  { %v944_v34 = vsel %vm941_vm12, %v943_v32, %v939_v29  ;;  %vm953_vm15 = vmor %vm951_vm14, %vm952_vm13  ;;  %v2995_v29 = vld [vmem:[%s5355_s12 + $0xb4] sm:$0xf0] }
 0x299   :  { %v948_v33 = vsub.f32 1.0, %v947_v50  ;;  %v967_v39 = vsub.f32 1.0, %v944_v34  ;;  %v971_v59 = vmul.f32 %v944_v34, %v3687_v12  ;;  %v5407_v12 = vld [vmem:[#allocation5_spill] sm:$0xff]  ;;  %v3458_v50 = vld [vmem:[%s5355_s12 + $0xac] sm:$0xf] }
 0x29b   :  { %v949_v24 = vmul.f32 %v3503_v54, %v948_v33  ;;  %v969_v6 = vmul.f32 %v3505_v44, %v967_v39  ;;  %v3507_v11 = vpop.eup %3506  ;;  %v2998_v33 = vor.u32 %v3458_v50, %v2995_v29 }
 0x29d   :  { %v950_v17 = vadd.f32 %v3503_v54, %v949_v24  ;;  %v4371_v42 = vadd.f32 %v971_v59, %v969_v6  ;;  %v2983_v24 = vld [vmem:[%s5355_s12 + $0x9c] sm:$0xf0] }
 0x29e   :  { %v2986_v38 = vor.u32 %v3455_v35, %v2983_v24  ;;  %v3001_v24 = vld [vmem:[%s5355_s12 + $0xb0] sm:$0xf] }
 0x29f   :  { %v954_v41 = vsel %vm953_vm15, %v3503_v54, %v950_v17  ;;  %v3452_v17 = vld [vmem:[%s5355_s12 + $0x7c] sm:$0xf] }
 0x2a0   :  { %v959_v48 = vsel %vm956_vm1, %v958_v40, %v954_v41  ;;  %v3449_v40 = vld [vmem:[%s5355_s12 + $0x64] sm:$0xf]  ;;  %v2959_v41 = vld [vmem:[%s5355_s12 + $0x6c] sm:$0xf0] }
 0x2a1   :  { %v968_v3 = vsub.f32 1.0, %v959_v48  ;;  %v972_v23 = vmul.f32 %v959_v48, %v3689_v13  ;;  %v5408_v13 = vld [vmem:[#allocation7_spill] sm:$0xff]  ;;  %v2962_v44 = vor.u32 %v3449_v40, %v2959_v41 }
 0x2a2   :  { %v3446_v48 = vld [vmem:[%s5355_s12 + $0x4c] sm:$0xf] }
 0x2a3   :  { %v970_v46 = vmul.f32 %v3507_v11, %v968_v3  ;;  %v2947_v3 = vld [vmem:[%s5355_s12 + $0x54] sm:$0xf0]  ;;  %v3443_v11 = vld [vmem:[%s5355_s12 + $0x34] sm:$0xf] }
 0x2a4   :  { %v2950_v6 = vor.u32 %v3446_v48, %v2947_v3  ;;  %v3457_v48 = vld [vmem:[%s5355_s12 + $0xa0] sm:$0xf0] }
 0x2a5   :  { %v4373_v60 = vadd.f32 %v972_v23, %v970_v46  ;;  %v2935_v46 = vld [vmem:[%s5355_s12 + $0x3c] sm:$0xf0]  ;;  %v3440_v23 = vld [vmem:[%s5355_s12 + $0x1c] sm:$0xf] }
 0x2a6   :  { %v2938_v59 = vor.u32 %v3443_v11, %v2935_v46  ;;  %v3454_v11 = vld [vmem:[%s5355_s12 + $0x88] sm:$0xf0] }
 0x2a7   :  { %v4377_v57 = vpack.c.bf16 %v4373_v60, %v4371_v42 }
 0x2a9   :  { %983 = vmatpush.bf16.msra.mxu3 %v4377_v57 }
 0x2ac   :  { %2900 = vmatmul.msk.bf16.vlgmr.msra.gmra.mxu3 %vm285_vm0, %v3698_v15  ;;  %v5409_v15 = vld [vmem:[#allocation9_spill] sm:$0xff] }
 0x2ad   :  { %1071 = vmatpush.bf16.msrb.mxu3 %v3942_v53 }
 0x2b1   :  { %1072 = vmatpush.bf16.msrb.mxu3 %v3960_v61 }
 0x2b5   :  { %1073 = vmatpush.bf16.msrb.mxu3 %v3981_v19 }
 0x2b9   :  { %1074 = vmatpush.bf16.msrb.mxu3 %v3999_v10 }
 0x2bc   :  { %2901 = vmatmul.msk.bf16.gmra.mxu3 %vm285_vm0, %v3729_v20  ;;  %v5410_v20 = vld [vmem:[#allocation11_spill] sm:$0xff] }
 0x2bd   :  { %1075 = vmatpush.bf16.msrb.mxu3 %v4020_v52 }
 0x2c1   :  { %1076 = vmatpush.bf16.msrb.mxu3 %v4043_v1 }
 0x2c5   :  { %1077 = vmatpush.bf16.msrb.mxu3 %v4068_v25 }
 0x2c9   :  { %1078 = vmatpush.bf16.msrb.mxu3 %v4091_v49  ;;  %v5411_v49 = vld [vmem:[#allocation2_spill] sm:$0xff] }
 0x2cc   :  { %2902 = vmatmul.msk.bf16.gmra.mxu3 %vm285_vm0, %v3737_v21 }
 0x2cd   :  { %1127 = vmatpush.bf16.msra.mxu3 %v4118_v4  ;;  %v5412_v4 = vld [vmem:[#allocation3_spill] sm:$0xff] }
 0x2d1   :  { %1128 = vmatpush.bf16.msra.mxu3 %v4145_v9 }
 0x2d5   :  { %1129 = vmatpush.bf16.msra.mxu3 %v4172_v62 }
 0x2d9   :  { %1130 = vmatpush.bf16.msra.mxu3 %v5407_v12  ;;  %v2923_v12 = vld [vmem:[%s5355_s12 + $0x24] sm:$0xf0] }
 0x2dd   :  { %1131 = vmatpush.bf16.msra.mxu3 %v5408_v13  ;;  %v2926_v13 = vor.u32 %v3440_v23, %v2923_v12  ;;  %v3451_v23 = vld [vmem:[%s5355_s12 + $0x70] sm:$0xf0] }
 0x2e1   :  { %1132 = vmatpush.bf16.msra.mxu3 %v5409_v15  ;;  %v3437_v15 = vld [vmem:[%s5355_s12 + $0x4] sm:$0xf] }
 0x2e5   :  { %1133 = vmatpush.bf16.msra.mxu3 %v5410_v20  ;;  %v2911_v20 = vld [vmem:[%s5355_s12 + $0xc] sm:$0xf0] }
 0x2e9   :  { %1134 = vmatpush.bf16.msra.mxu3 %v4269_v56 }
 0x32f   :  { %v985_v53 = vpop.f32.mrf.mxu3 }
 0x330   :  { %v1000_v61 = vpack.c.bf16 %v985_v53, %v985_v53  ;;  %v2914_v53 = vor.u32 %v3437_v15, %v2911_v20  ;;  %v3448_v15 = vld [vmem:[%s5355_s12 + $0x58] sm:$0xf0] }
 0x332   :  { %v1008_v52 = vunpack.c.l.b16 %v1000_v61  ;;  %v2993_v61 = vld [vmem:[%s5355_s12 + $0xa8] sm:$0xf] }
 0x337   :  { %v987_v19 = vpop.f32.mrf.mxu3 }
 0x338   :  { %v1001_v10 = vpack.c.bf16 %v987_v19, %v987_v19  ;;  %v3459_v19 = vld [vmem:[%s5355_s12 + $0xb0] sm:$0xf0] }
 0x33a   :  { %v1009_v1 = vunpack.c.l.b16 %v1001_v10  ;;  %v2994_v10 = vor.u32 %v3459_v19, %v2993_v61  ;;  %v3445_v61 = vld [vmem:[%s5355_s12 + $0x40] sm:$0xf0] }
 0x33c   :  { %v1010_v25 = vpack.c.b16 %v1009_v1, %v1008_v52  ;;  %v2981_v52 = vld [vmem:[%s5355_s12 + $0x90] sm:$0xf]  ;;  %v3456_v1 = vld [vmem:[%s5355_s12 + $0x98] sm:$0xf0] }
 0x33e   :  { %1020 = vmatmul.bf16.vlgmr.msrb.gmra.mxu1 %v1010_v25  ;;  %v2982_v25 = vor.u32 %v3456_v1, %v2981_v52  ;;  %v3442_v52 = vld [vmem:[%s5355_s12 + $0x28] sm:$0xf0] }
 0x33f   :  { %v990_v21 = vpop.f32.mrf.mxu3  ;;  %1141 = vmatpush.bf16.msrb.mxu1 %v5411_v49  ;;  %v3453_v49 = vld [vmem:[%s5355_s12 + $0x80] sm:$0xf0] }
 0x340   :  { %v1002_v9 = vpack.c.bf16 %v990_v21, %v990_v21  ;;  %v2969_v21 = vld [vmem:[%s5355_s12 + $0x78] sm:$0xf] }
 0x342   :  { %v1028_v0 = vunpack.c.l.b16 %v1002_v9  ;;  %v2957_v9 = vld [vmem:[%s5355_s12 + $0x60] sm:$0xf] }
 0x343   :  { %1142 = vmatpush.bf16.msrb.mxu1 %v5412_v4  ;;  %v2970_v4 = vor.u32 %v3453_v49, %v2969_v21 }
 0x347   :  { %v992_v62 = vpop.f32.mrf.mxu3  ;;  %1143 = vmatpush.bf16.msrb.mxu1 %v5413_v5 }
 0x348   :  { %v1003_v43 = vpack.c.bf16 %v992_v62, %v992_v62  ;;  %v3450_v62 = vld [vmem:[%s5355_s12 + $0x68] sm:$0xf0] }
 0x349   :  { %v2958_v5 = vor.u32 %v3450_v62, %v2957_v9 }
 0x34a   :  { %v1029_v56 = vunpack.c.l.b16 %v1003_v43  ;;  %v2945_v43 = vld [vmem:[%s5355_s12 + $0x48] sm:$0xf] }
 0x34b   :  { %1144 = vmatpush.bf16.msrb.mxu1 %v5414_v18  ;;  %v2933_v18 = vld [vmem:[%s5355_s12 + $0x30] sm:$0xf] }
 0x34c   :  { %v1030_v45 = vpack.c.b16 %v1029_v56, %v1028_v0  ;;  %v3447_v0 = vld [vmem:[%s5355_s12 + $0x50] sm:$0xf0] }
 0x34d   :  { %v2946_v56 = vor.u32 %v3447_v0, %v2945_v43 }
 0x34e   :  { %1040 = vmatmul.bf16.vlgmr.msrb.gmra.mxu0 %v1030_v45  ;;  %v3444_v45 = vld [vmem:[%s5355_s12 + $0x38] sm:$0xf0] }
 0x34f   :  { %v995_v58 = vpop.f32.mrf.mxu3  ;;  %1145 = vmatpush.bf16.msrb.mxu1 %v5415_v8  ;;  %1528 = vmatpush.bf16.msrb.mxu0 %v2994_v10  ;;  %v2921_v8 = vld [vmem:[%s5355_s12 + $0x18] sm:$0xf]  ;;  %v2929_v10 = vld [vmem:[%s5355_s12 + $0x20] sm:$0xf] }
 0x350   :  { %v1004_v28 = vpack.c.bf16 %v995_v58, %v995_v58  ;;  %v2934_v58 = vor.u32 %v3444_v45, %v2933_v18  ;;  %v2930_v1 = vor.u32 %v3442_v52, %v2929_v10 }
 0x352   :  { %v1048_v30 = vunpack.c.l.b16 %v1004_v28 }
 0x353   :  { %1146 = vmatpush.bf16.msrb.mxu1 %v5416_v2  ;;  %1529 = vmatpush.bf16.msrb.mxu0 %v2982_v25  ;;  %v3441_v2 = vld [vmem:[%s5355_s12 + $0x20] sm:$0xf0]  ;;  %v2917_v25 = vld [vmem:[%s5355_s12 + $0x8] sm:$0xf] }
 0x354   :  { %v2922_v28 = vor.u32 %v3441_v2, %v2921_v8 }
 0x357   :  { %v997_v54 = vpop.f32.mrf.mxu3  ;;  %1147 = vmatpush.bf16.msrb.mxu1 %v5417_v7  ;;  %1530 = vmatpush.bf16.msrb.mxu0 %v2970_v4  ;;  %v3438_v7 = vld [vmem:[%s5355_s12 + $0x8] sm:$0xf0] }
 0x358   :  { %v1005_v31 = vpack.c.bf16 %v997_v54, %v997_v54  ;;  %v2909_v54 = vld [vmem:[%s5355_s12] sm:$0xf] }
 0x35a   :  { %v1049_v32 = vunpack.c.l.b16 %v1005_v31  ;;  %v2910_v31 = vor.u32 %v3438_v7, %v2909_v54 }
 0x35b   :  { %1148 = vmatpush.bf16.msrb.mxu1 %v4274_v47  ;;  %v2971_v47 = vld [vmem:[%s5355_s12 + $0x84] sm:$0xf0]  ;;  %1531 = vmatpush.bf16.msrb.mxu0 %v2958_v5 }
 0x35c   :  { %v1050_v34 = vpack.c.b16 %v1049_v32, %v1048_v30  ;;  %v2974_v39 = vor.u32 %v3452_v17, %v2971_v47 }
 0x35e   :  { %1060 = vmatmul.bf16.vlgmr.msrb.gmra.mxu2 %v1050_v34 }
 0x35f   :  { %1542 = vmatpush.bf16.msrb.mxu2 %v2998_v33  ;;  %1532 = vmatpush.bf16.msrb.mxu0 %v2946_v56 }
 0x363   :  { %1543 = vmatpush.bf16.msrb.mxu2 %v2986_v38  ;;  %1533 = vmatpush.bf16.msrb.mxu0 %v2934_v58  ;;  %v3460_v38 = vld [vmem:[%s5355_s12 + $0xb8] sm:$0xf0] }
 0x364   :  { %v3002_v40 = vor.u32 %v3460_v38, %v3001_v24 }
 0x367   :  { %1544 = vmatpush.bf16.msrb.mxu2 %v2974_v39  ;;  %1534 = vmatpush.bf16.msrb.mxu0 %v2922_v28 }
 0x36b   :  { %1545 = vmatpush.bf16.msrb.mxu2 %v2962_v44  ;;  %1535 = vmatpush.bf16.msrb.mxu0 %v2910_v31  ;;  %v2989_v44 = vld [vmem:[%s5355_s12 + $0x98] sm:$0xf] }
 0x36c   :  { %v2990_v3 = vor.u32 %v3457_v48, %v2989_v44 }
 0x36e   :  { %1121 = vmatmul.bf16.vlgmr.msra.gmra.mxu2 %v4377_v57 }
 0x36f   :  { %1546 = vmatpush.bf16.msrb.mxu2 %v2950_v6  ;;  %v2977_v6 = vld [vmem:[%s5355_s12 + $0x80] sm:$0xf] }
 0x370   :  { %v2978_v46 = vor.u32 %v3454_v11, %v2977_v6 }
 0x373   :  { %1547 = vmatpush.bf16.msrb.mxu2 %v2938_v59  ;;  %v2965_v59 = vld [vmem:[%s5355_s12 + $0x68] sm:$0xf] }
 0x374   :  { %v2966_v12 = vor.u32 %v3451_v23, %v2965_v59 }
 0x377   :  { %1548 = vmatpush.bf16.msrb.mxu2 %v2926_v13  ;;  %v2953_v13 = vld [vmem:[%s5355_s12 + $0x50] sm:$0xf] }
 0x378   :  { %v2954_v20 = vor.u32 %v3448_v15, %v2953_v13 }
 0x37b   :  { %1549 = vmatpush.bf16.msrb.mxu2 %v2914_v53  ;;  %v2941_v53 = vld [vmem:[%s5355_s12 + $0x38] sm:$0xf] }
 0x37c   :  { %v2942_v19 = vor.u32 %v3445_v61, %v2941_v53 }
 0x37e   :  { %1550 = vmatmul.bf16.vlgmr.msrb.gmra.mxu2 %v3693_v14 }
 0x3bb   :  { %v1021_v29 = vpop.f32.mrf.mxu1 }
 0x3c3   :  { %v1023_v33 = vpop.f32.mrf.mxu1 }
 0x3cb   :  { %v1041_v50 = vpop.f32.mrf.mxu0 }
 0x3cc   :  { %v1066_v34 = vadd.f32 %v1041_v50, %v1021_v29 }
 0x3d3   :  { %v1043_v32 = vpop.f32.mrf.mxu0 }
 0x3d4   :  { %v1067_v35 = vadd.f32 %v1043_v32, %v1023_v33 }
 0x3e1   :  { %v1061_v30 = vpop.f32.mrf.mxu2 }
 0x3e2   :  { %v1068_v47 = vadd.f32 %v1066_v34, %v1061_v30 }
 0x3e9   :  { %v1063_v17 = vpop.f32.mrf.mxu2 }
 0x3ea   :  { %v1069_v39 = vadd.f32 %v1067_v35, %v1063_v17 }
 0x3ec   :  { %v1070_v41 = vpack.c.bf16 %v1069_v39, %v1068_v47 }
 0x3ee   :  { %1079 = vmatmul.bf16.vlgmr.msrb.gmra.mxu3 %v1070_v41  ;;  %1093 = vmatmul.bf16.vlgmr.msra.gmra.mxu1 %v1070_v41 }
 0x3ef   :  { %1107 = vmatmul.bf16.vlgmr.msra.gmra.mxu0 %v1070_v41  ;;  %1556 = vmatpush.bf16.msrb.mxu3 %v3002_v40 }
 0x3f1   :  { %v1122_v49 = vpop.f32.mrf.mxu2 }
 0x3f2   :  { %v1123_v9 = vadd.f32 %v1122_v49, %v4315_v26 }
 0x3f3   :  { %1557 = vmatpush.bf16.msrb.mxu3 %v2990_v3 }
 0x3f7   :  { %1558 = vmatpush.bf16.msrb.mxu3 %v2978_v46 }
 0x3f9   :  { %v1124_v0 = vpop.f32.mrf.mxu2 }
 0x3fa   :  { %v1125_v18 = vadd.f32 %v1124_v0, %v4315_v26 }
 0x3fb   :  { %1559 = vmatpush.bf16.msrb.mxu3 %v2966_v12 }
 0x3fe   :  { %1135 = vmatmul.bf16.vlgmr.msra.gmra.mxu3 %v4377_v57  ;;  %1149 = vmatmul.bf16.vlgmr.msrb.gmra.mxu1 %v4377_v57  ;;  %v3439_v57 = vld [vmem:[%s5355_s12 + $0x10] sm:$0xf0] }
 0x3ff   :  { %1536 = vmatmul.bf16.vlgmr.msrb.gmra.mxu0 %v3693_v14  ;;  %1560 = vmatpush.bf16.msrb.mxu3 %v2954_v20  ;;  %v2918_v21 = vor.u32 %v3439_v57, %v2917_v25 }
 0x403   :  { %1561 = vmatpush.bf16.msrb.mxu3 %v2942_v19 }
 0x407   :  { %1562 = vmatpush.bf16.msrb.mxu3 %v2930_v1 }
 0x40b   :  { %1563 = vmatpush.bf16.msrb.mxu3 %v2918_v21 }
 0x40e   :  { %1564 = vmatmul.bf16.vlgmr.msrb.gmra.mxu3 %v3693_v14 }
 0x46b   :  { %v1094_v45 = vpop.f32.mrf.mxu1 }
 0x46c   :  { %v1095_v7 = vadd.f32 %v1094_v45, %v4336_v63  ;;  %v1108_v3 = vpop.f32.mrf.mxu0 }
 0x471   :  { %v1080_v4 = vpop.f32.mrf.mxu3 }
 0x472   :  { %v1081_v62 = vadd.f32 %v1080_v4, %v4320_v27 }
 0x473   :  { %v1096_v31 = vpop.f32.mrf.mxu1 }
 0x474   :  { %v1155_v5 = vadd.f32 %v1123_v9, %v1081_v62  ;;  %v1097_v34 = vadd.f32 %v1096_v31, %v4343_v22  ;;  %v1110_v9 = vpop.f32.mrf.mxu0 }
 0x476   :  { %v2903_v43 = vmul.f32 -1.442695, %v1155_v5  ;;  %v1109_v5 = vadd.f32 %v1108_v3, %v4359_v16  ;;  %v4631_v3 = vld [vmem:[%s5356_s10 + $0x18] sm:$0xff] }
 0x478   :  { %3508 = vpow2.f32 %v2903_v43 }
 0x479   :  { %v1082_v56 = vpop.f32.mrf.mxu3 }
 0x47a   :  { %v1083_v58 = vadd.f32 %v1082_v56, %v4327_v36 }
 0x47b   :  { %v1150_v47 = vpop.f32.mrf.mxu1 }
 0x47c   :  { %v1156_v8 = vadd.f32 %v1125_v18, %v1083_v58  ;;  %v1151_v25 = vadd.f32 %v1150_v47, %v4351_v37  ;;  %v1111_v58 = vadd.f32 %v1110_v9, %v4365_v55 }
 0x47e   :  { %v3509_v2 = vpop.eup %3508  ;;  %v2904_v28 = vmul.f32 -1.442695, %v1156_v8 }
 0x47f   :  { %v1163_v14 = vadd.f32 1.0, %v3509_v2 }
 0x480   :  { %3510 = vpow2.f32 %v2904_v28 }
 0x481   :  { %3512 = vrcp.f32 %v1163_v14  ;;  %v1136_v54 = vpop.f32.mrf.mxu3  ;;  %v1176_v6 = vand.u32 2147483648, %v1163_v14  ;;  %vm1170_vm3 = vweird.f32 %v1163_v14  ;;  %v1174_v22 = vand.u32 2147483647, %v1163_v14 }
 0x482   :  { %v1137_v27 = vadd.f32 %v1136_v54, %v4331_v51 }
 0x483   :  { %v1177_v13 = vor.u32 1.1754944e-38, %v1176_v6  ;;  %vm1175_vm7 = vcmp.eq.f32.partialorder %v1174_v22, 8.507059e+37  ;;  %v1152_v10 = vpop.f32.mrf.mxu1  ;;  %v4636_v6 = vld [vmem:[%s5356_s10 + $0x78] sm:$0xff]  ;;  %v4648_v22 = vld [vmem:[%s5356_s10 + $0x10] sm:$0xff] }
 0x484   :  { %v1195_v50 = vadd.f32 %v1137_v27, %v1095_v7  ;;  %v1153_v4 = vadd.f32 %v1152_v10, %v4351_v37  ;;  %1729 = vmatpush.bf16.msra.mxu2 %v4636_v6  ;;  %v4720_v10 = vld [vmem:[%s5356_s10 + $0x90] sm:$0xff] }
 0x486   :  { %v3511_v29 = vpop.eup %3510  ;;  %v2905_v30 = vmul.f32 -1.442695, %v1195_v50 }
 0x487   :  { %v3513_v32 = vpop.eup %3512  ;;  %v1164_v26 = vadd.f32 1.0, %v3511_v29 }
 0x488   :  { %v1166_v33 = vmul.f32 %v3513_v32, %v1163_v14  ;;  %3514 = vpow2.f32 %v2905_v30  ;;  %vm1171_vm2 = vweird.f32 %v3513_v32 }
 0x489   :  { %3516 = vrcp.f32 %v1164_v26  ;;  %v1138_v36 = vpop.f32.mrf.mxu3  ;;  %vm1172_vm4 = vmor %vm1170_vm3, %vm1171_vm2  ;;  %v1189_v23 = vand.u32 2147483647, %v1164_v26  ;;  %vm1185_vm6 = vweird.f32 %v1164_v26 }
 0x48a   :  { %v1167_v35 = vsub.f32 1.0, %v1166_v33  ;;  %v1139_v24 = vadd.f32 %v1138_v36, %v4331_v51  ;;  %v1191_v51 = vand.u32 2147483648, %v1164_v26 }
 0x48b   :  { %vm1190_vm9 = vcmp.eq.f32.partialorder %v1189_v23, 8.507059e+37  ;;  %v4671_v23 = vld [vmem:[%s5356_s10 + $0x68] sm:$0xff] }
 0x48c   :  { %v1196_v38 = vadd.f32 %v1139_v24, %v1097_v34  ;;  %v1168_v17 = vmul.f32 %v3513_v32, %v1167_v35  ;;  %v1192_v1 = vor.u32 1.1754944e-38, %v1191_v51  ;;  %v4659_v51 = vld [vmem:[%s5356_s10 + $0xb0] sm:$0xff] }
 0x48e   :  { %v3515_v63 = vpop.eup %3514  ;;  %v2906_v39 = vmul.f32 -1.442695, %v1196_v38  ;;  %v1169_v48 = vadd.f32 %v3513_v32, %v1168_v17 }
 0x48f   :  { %v3517_v40 = vpop.eup %3516  ;;  %v1203_v41 = vadd.f32 1.0, %v3515_v63 }
 0x490   :  { %v1181_v44 = vmul.f32 %v3517_v40, %v1164_v26  ;;  %3518 = vpow2.f32 %v2906_v39  ;;  %vm1186_vm5 = vweird.f32 %v3517_v40  ;;  %v1173_v59 = vsel %vm1172_vm4, %v3513_v32, %v1169_v48  ;;  %v4586_v39 = vld [vmem:[%s5349_s3] sm:$0xff]  ;;  %v4624_v48 = vld [vmem:[%s5349_s3 + $0x10] sm:$0xff] }
 0x491   :  { %3520 = vrcp.f32 %v1203_v41  ;;  %vm1187_vm8 = vmor %vm1185_vm6, %vm1186_vm5  ;;  %v1178_v61 = vsel %vm1175_vm7, %v1177_v13, %v1173_v59  ;;  %v1216_v0 = vand.u32 2147483648, %v1203_v41  ;;  %vm1210_vm11 = vweird.f32 %v1203_v41  ;;  %5418 = vst [vmem:[#allocation5_spill] sm:$0xff] %v4624_v48  ;;  %v4666_v59 = vld [vmem:[%s5356_s10 + $0x8] sm:$0xff]  ;;  %v4684_v13 = vld [vmem:[%s5356_s10] sm:$0xff] }
 0x492   :  { %v1182_v11 = vsub.f32 1.0, %v1181_v44  ;;  %v1235_v49 = vmul.f32 %v1178_v61, %v1151_v25  ;;  %v1214_v18 = vand.u32 2147483647, %v1203_v41  ;;  %v4617_v44 = vld [vmem:[%s5349_s3 + $0x8] sm:$0xff]  ;;  %v4709_v61 = vld [vmem:[%s5356_s10 + $0x98] sm:$0xff]  ;;  %v4738_v25 = vld [vmem:[%s5356_s10 + $0x40] sm:$0xff] }
 0x493   :  { %v1217_v54 = vor.u32 1.1754944e-38, %v1216_v0  ;;  %v3260_v0 = vld [vmem:[%s5357_s13 + $0x78] sm:$0xf] }
 0x494   :  { %v1183_v46 = vmul.f32 %v3517_v40, %v1182_v11  ;;  %v1237_v8 = vadd.f32 %v1235_v49, %v1109_v5  ;;  %vm1215_vm13 = vcmp.eq.f32.partialorder %v1214_v18, 8.507059e+37  ;;  %v4643_v11 = vld [vmem:[%s5356_s10 + $0xb8] sm:$0xff]  ;;  %v3483_v49 = vld [vmem:[%s5357_s13 + $0xb0] sm:$0xf0] }
 0x495   :  { %1797 = vmatpush.bf16.msra.mxu3 %v4643_v11  ;;  %v3480_v5 = vld [vmem:[%s5357_s13 + $0x98] sm:$0xf0] }
 0x496   :  { %v3519_v12 = vpop.eup %3518  ;;  %v1184_v15 = vadd.f32 %v3517_v40, %v1183_v46  ;;  %v4653_v46 = vld [vmem:[%s5356_s10 + $0x70] sm:$0xff] }
 0x497   :  { %v3521_v20 = vpop.eup %3520  ;;  %v1204_v53 = vadd.f32 1.0, %v3519_v12  ;;  %1730 = vmatpush.bf16.msra.mxu2 %v4653_v46  ;;  %v4679_v12 = vld [vmem:[%s5356_s10 + $0xa8] sm:$0xff] }
 0x498   :  { %v1206_v19 = vmul.f32 %v3521_v20, %v1203_v41  ;;  %v1188_v52 = vsel %vm1187_vm8, %v3517_v40, %v1184_v15  ;;  %vm1211_vm10 = vweird.f32 %v3521_v20  ;;  %v4605_v40 = vld [vmem:[%s5356_s10 + $0x28] sm:$0xff]  ;;  %v4611_v41 = vld [vmem:[%s5356_s10 + $0x20] sm:$0xff] }
 0x499   :  { %3522 = vrcp.f32 %v1204_v53  ;;  %v1193_v21 = vsel %vm1190_vm9, %v1192_v1, %v1188_v52  ;;  %vm1212_vm12 = vmor %vm1210_vm11, %vm1211_vm10  ;;  %v1231_v27 = vand.u32 2147483648, %v1204_v53  ;;  %v1229_v31 = vand.u32 2147483647, %v1204_v53  ;;  %1798 = vmatpush.bf16.msra.mxu3 %v4659_v51  ;;  %v4689_v15 = vld [vmem:[%s5356_s10 + $0x60] sm:$0xff]  ;;  %v4726_v52 = vld [vmem:[%s5356_s10 + $0x48] sm:$0xff] }
 0x49a   :  { %v1207_v57 = vsub.f32 1.0, %v1206_v19  ;;  %v1236_v43 = vmul.f32 %v1193_v21, %v1153_v4  ;;  %3524 = vtanh.f32 %v1237_v8  ;;  %vm1225_vm15 = vweird.f32 %v1204_v53  ;;  %v4714_v19 = vld [vmem:[%s5356_s10 + $0x50] sm:$0xff]  ;;  %v4733_v1 = vld [vmem:[%s5356_s10 + $0x88] sm:$0xff] }
 0x49b   :  { %v1232_v55 = vor.u32 1.1754944e-38, %v1231_v27  ;;  %vm1230_vm2 = vcmp.eq.f32.partialorder %v1229_v31, 8.507059e+37  ;;  %1731 = vmatpush.bf16.msra.mxu2 %v4671_v23  ;;  %v3284_v21 = vld [vmem:[%s5357_s13 + $0xa8] sm:$0xf] }
 0x49c   :  { %v1208_v62 = vmul.f32 %v3521_v20, %v1207_v57  ;;  %v1238_v14 = vadd.f32 %v1236_v43, %v1111_v58  ;;  %v4745_v57 = vld [vmem:[%s5356_s10 + $0x80] sm:$0xff]  ;;  %v4753_v4 = vor.u32 %v3483_v49, %v3284_v21  ;;  %v3236_v27 = vld [vmem:[%s5357_s13 + $0x48] sm:$0xf] }
 0x49d   :  { %1799 = vmatpush.bf16.msra.mxu3 %v4679_v12 }
 0x49e   :  { %v1209_v56 = vadd.f32 %v3521_v20, %v1208_v62  ;;  %3526 = vtanh.f32 %v1238_v14  ;;  %v3272_v62 = vld [vmem:[%s5357_s13 + $0x90] sm:$0xf] }
 0x49f   :  { %v3523_v45 = vpop.eup %3522  ;;  %1732 = vmatpush.bf16.msra.mxu2 %v4689_v15  ;;  %v4763_v43 = vor.u32 %v3480_v5, %v3272_v62 }
 0x4a0   :  { %v1221_v2 = vmul.f32 %v3523_v45, %v1204_v53  ;;  %v1213_v28 = vsel %vm1212_vm12, %v3521_v20, %v1209_v56  ;;  %vm1226_vm14 = vweird.f32 %v3523_v45  ;;  %v3525_v32 = vpop.eup %3524  ;;  %v4697_v20 = vld [vmem:[%s5356_s10 + $0xa0] sm:$0xff]  ;;  %v4702_v53 = vld [vmem:[%s5356_s10 + $0x58] sm:$0xff] }
 0x4a1   :  { %v1218_v7 = vsel %vm1215_vm13, %v1217_v54, %v1213_v28  ;;  %vm1227_vm1 = vmor %vm1225_vm15, %vm1226_vm14  ;;  %1800 = vmatpush.bf16.msra.mxu3 %v4697_v20  ;;  %v3477_v56 = vld [vmem:[%s5357_s13 + $0x80] sm:$0xf0]  ;;  %v3474_v28 = vld [vmem:[%s5357_s13 + $0x68] sm:$0xf0] }
 0x4a2   :  { %v1222_v37 = vsub.f32 1.0, %v1221_v2  ;;  %v1241_v29 = vsub.f32 1.0, %v1218_v7  ;;  %v1245_v24 = vmul.f32 %v1218_v7, %v4371_v42  ;;  %v4593_v42 = vld [vmem:[%s5356_s10 + $0x38] sm:$0xff]  ;;  %v3248_v2 = vld [vmem:[%s5357_s13 + $0x60] sm:$0xf] }
 0x4a3   :  { %1661 = vmatpush.bf16.msra.mxu0 %v4593_v42  ;;  %1733 = vmatpush.bf16.msra.mxu2 %v4702_v53 }
 0x4a4   :  { %v1223_v16 = vmul.f32 %v3523_v45, %v1222_v37  ;;  %v1243_v36 = vmul.f32 %v3525_v32, %v1241_v29  ;;  %v3527_v34 = vpop.eup %3526  ;;  %v4781_v37 = vor.u32 %v3474_v28, %v3248_v2  ;;  %v3468_v29 = vld [vmem:[%s5357_s13 + $0x38] sm:$0xf0]  ;;  %v3212_v32 = vld [vmem:[%s5357_s13 + $0x18] sm:$0xf]  ;;  %v3431_v28 = vld [vmem:[%s5358_s11 + $0x94] sm:$0xf] }
 0x4a5   :  { %1801 = vmatpush.bf16.msra.mxu3 %v4709_v61 }
 0x4a6   :  { %v1224_v50 = vadd.f32 %v3523_v45, %v1223_v16  ;;  %v4574_v17 = vadd.f32 %v1245_v24, %v1243_v36  ;;  %v3471_v16 = vld [vmem:[%s5357_s13 + $0x50] sm:$0xf0]  ;;  %v3200_v36 = vld [vmem:[%s5357_s13] sm:$0xf] }
 0x4a7   :  { %1734 = vmatpush.bf16.msra.mxu2 %v4714_v19  ;;  %v4790_v31 = vor.u32 %v3471_v16, %v3236_v27  ;;  %v3429_v27 = vld [vmem:[%s5358_s11 + $0x80] sm:$0xf0] }
 0x4a8   :  { %v1228_v30 = vsel %vm1227_vm1, %v3523_v45, %v1224_v50  ;;  %v4772_v45 = vor.u32 %v3477_v56, %v3260_v0  ;;  %v3224_v50 = vld [vmem:[%s5357_s13 + $0x30] sm:$0xf] }
 0x4a9   :  { %v1233_v26 = vsel %vm1230_vm2, %v1232_v55, %v1228_v30  ;;  %1802 = vmatpush.bf16.msra.mxu3 %v4720_v10  ;;  %v4799_v30 = vor.u32 %v3468_v29, %v3224_v50  ;;  %v3428_v50 = vld [vmem:[%s5358_s11 + $0x7c] sm:$0xf]  ;;  %v3166_v29 = vld [vmem:[%s5358_s11 + $0x84] sm:$0xf0] }
 0x4aa   :  { %v1242_v33 = vsub.f32 1.0, %v1233_v26  ;;  %v1246_v38 = vmul.f32 %v1233_v26, %v4373_v60  ;;  %v4599_v60 = vld [vmem:[%s5356_s10 + $0x30] sm:$0xff]  ;;  %v3465_v26 = vld [vmem:[%s5357_s13 + $0x20] sm:$0xf0] }
 0x4ab   :  { %1662 = vmatpush.bf16.msra.mxu0 %v4599_v60  ;;  %1735 = vmatpush.bf16.msra.mxu2 %v4726_v52 }
 0x4ac   :  { %v1244_v35 = vmul.f32 %v3527_v34, %v1242_v33  ;;  %v4808_v33 = vor.u32 %v3465_v26, %v3212_v32  ;;  %v3462_v34 = vld [vmem:[%s5357_s13 + $0x8] sm:$0xf0]  ;;  %v3152_v32 = vld [vmem:[%s5358_s11 + $0x60] sm:$0xf]  ;;  %v3169_v26 = vor.u32 %v3428_v50, %v3166_v29  ;;  %v3417_v50 = vld [vmem:[%s5358_s11 + $0x20] sm:$0xf0] }
 0x4ad   :  { %1803 = vmatpush.bf16.msra.mxu3 %v4733_v1  ;;  %v4817_v21 = vor.u32 %v3462_v34, %v3200_v36  ;;  %v3426_v36 = vld [vmem:[%s5358_s11 + $0x68] sm:$0xf0]  ;;  %v3196_v34 = vld [vmem:[%s5358_s11 + $0xb0] sm:$0xf]  ;;  %v3416_v29 = vld [vmem:[%s5358_s11 + $0x1c] sm:$0xf] }
 0x4ae   :  { %v4576_v63 = vadd.f32 %v1246_v38, %v1244_v35 }
 0x4af   :  { %1663 = vmatpush.bf16.msra.mxu0 %v4605_v40  ;;  %1736 = vmatpush.bf16.msra.mxu2 %v4738_v25 }
 0x4b0   :  { %v4580_v47 = vpack.c.bf16 %v4576_v63, %v4574_v17 }
 0x4b1   :  { %1804 = vmatpush.bf16.msra.mxu3 %v4745_v57 }
 0x4b2   :  { %1584 = vmatpush.bf16.msra.mxu1 %v4580_v47 }
 0x4b3   :  { %1664 = vmatpush.bf16.msra.mxu0 %v4611_v41 }
 0x4b5   :  { %3003 = vmatmul.msk.bf16.vlgmr.msra.gmra.mxu1 %vm285_vm0, %v4586_v39  ;;  %2121 = vmatpush.bf16.msrb.mxu3 %v4753_v4 }
 0x4b7   :  { %1665 = vmatpush.bf16.msra.mxu0 %v4631_v3 }
 0x4b9   :  { %2122 = vmatpush.bf16.msrb.mxu3 %v4763_v43 }
 0x4bb   :  { %1666 = vmatpush.bf16.msra.mxu0 %v4648_v22 }
 0x4bd   :  { %2123 = vmatpush.bf16.msrb.mxu3 %v4772_v45 }
 0x4bf   :  { %1667 = vmatpush.bf16.msra.mxu0 %v4666_v59 }
 0x4c1   :  { %2124 = vmatpush.bf16.msrb.mxu3 %v4781_v37 }
 0x4c3   :  { %1668 = vmatpush.bf16.msra.mxu0 %v4684_v13 }
 0x4c5   :  { %3004 = vmatmul.msk.bf16.gmra.mxu1 %vm285_vm0, %v4617_v44  ;;  %2125 = vmatpush.bf16.msrb.mxu3 %v4790_v31 }
 0x4c9   :  { %2126 = vmatpush.bf16.msrb.mxu3 %v4799_v30 }
 0x4cd   :  { %2127 = vmatpush.bf16.msrb.mxu3 %v4808_v33 }
 0x4d1   :  { %2128 = vmatpush.bf16.msrb.mxu3 %v4817_v21 }
 0x4d5   :  { %3005 = vmatmul.msk.bf16.gmra.mxu1 %vm285_vm0, %v4624_v48 }
 0x532   :  { %v1586_v9 = vpop.f32.mrf.mxu1 }
 0x533   :  { %v1601_v18 = vpack.c.bf16 %v1586_v9, %v1586_v9 }
 0x535   :  { %v1609_v14 = vunpack.c.l.b16 %v1601_v18 }
 0x53a   :  { %v1588_v58 = vpop.f32.mrf.mxu1 }
 0x53b   :  { %v1602_v8 = vpack.c.bf16 %v1588_v58, %v1588_v58 }
 0x53d   :  { %v1610_v54 = vunpack.c.l.b16 %v1602_v8 }
 0x53f   :  { %v1611_v7 = vpack.c.b16 %v1610_v54, %v1609_v14  ;;  %v3178_v54 = vld [vmem:[%s5358_s11 + $0x9c] sm:$0xf0] }
 0x540   :  { %v3181_v16 = vor.u32 %v3431_v28, %v3178_v54  ;;  %v3172_v28 = vld [vmem:[%s5358_s11 + $0x80] sm:$0xf]  ;;  %v3430_v54 = vld [vmem:[%s5358_s11 + $0x88] sm:$0xf0] }
 0x541   :  { %1669 = vmatmul.bf16.vlgmr.msra.gmra.mxu0 %v1611_v7  ;;  %v3164_v7 = vld [vmem:[%s5358_s11 + $0x78] sm:$0xf] }
 0x542   :  { %v1591_v55 = vpop.f32.mrf.mxu1 }
 0x543   :  { %v1603_v35 = vpack.c.bf16 %v1591_v55, %v1591_v55  ;;  %v4871_v55 = vor.u32 %v3429_v27, %v3164_v7  ;;  %v4942_v27 = vor.u32 %v3430_v54, %v3172_v28  ;;  %v3484_v28 = vld [vmem:[%s5357_s13 + $0xb8] sm:$0xf0] }
 0x545   :  { %v1677_v49 = vunpack.c.l.b16 %v1603_v35  ;;  %v3436_v35 = vld [vmem:[%s5358_s11 + $0xb8] sm:$0xf0] }
 0x54a   :  { %v1593_v24 = vpop.f32.mrf.mxu1 }
 0x54b   :  { %v1604_v38 = vpack.c.bf16 %v1593_v24, %v1593_v24  ;;  %v3425_v24 = vld [vmem:[%s5358_s11 + $0x64] sm:$0xf] }
 0x54d   :  { %v1678_v9 = vunpack.c.l.b16 %v1604_v38  ;;  %v3154_v38 = vld [vmem:[%s5358_s11 + $0x6c] sm:$0xf0] }
 0x54f   :  { %v1679_v62 = vpack.c.b16 %v1678_v9, %v1677_v49  ;;  %v4891_v49 = vor.u32 %v3436_v35, %v3196_v34  ;;  %v4894_v9 = vor.u32 %v3426_v36, %v3152_v32  ;;  %v3160_v36 = vld [vmem:[%s5358_s11 + $0x68] sm:$0xf]  ;;  %v3427_v34 = vld [vmem:[%s5358_s11 + $0x70] sm:$0xf0] }
 0x551   :  { %1737 = vmatmul.bf16.vlgmr.msra.gmra.mxu2 %v1679_v62  ;;  %v3157_v62 = vor.u32 %v3425_v24, %v3154_v38  ;;  %v4966_v24 = vor.u32 %v3427_v34, %v3160_v36  ;;  %v3104_v38 = vld [vmem:[%s5358_s11] sm:$0xf]  ;;  %v3280_v36 = vld [vmem:[%s5357_s13 + $0x98] sm:$0xf]  ;;  %v3481_v34 = vld [vmem:[%s5357_s13 + $0xa0] sm:$0xf0] }
 0x552   :  { %v1596_v5 = vpop.f32.mrf.mxu1  ;;  %1972 = vmatpush.bf16.msrb.mxu2 %v4891_v49 }
 0x553   :  { %v1605_v0 = vpack.c.bf16 %v1596_v5, %v1596_v5  ;;  %v3140_v5 = vld [vmem:[%s5358_s11 + $0x48] sm:$0xf] }
 0x555   :  { %v1745_v58 = vunpack.c.l.b16 %v1605_v0  ;;  %v3423_v0 = vld [vmem:[%s5358_s11 + $0x50] sm:$0xf0] }
 0x55a   :  { %v1598_v56 = vpop.f32.mrf.mxu1 }
 0x55b   :  { %v1606_v18 = vpack.c.bf16 %v1598_v56, %v1598_v56  ;;  %v3422_v56 = vld [vmem:[%s5358_s11 + $0x4c] sm:$0xf] }
 0x55d   :  { %v1746_v8 = vunpack.c.l.b16 %v1606_v18  ;;  %v4907_v18 = vor.u32 %v3423_v0, %v3140_v5  ;;  %v3413_v5 = vld [vmem:[%s5358_s11 + $0x4] sm:$0xf] }
 0x55f   :  { %v1747_v2 = vpack.c.b16 %v1746_v8, %v1745_v58  ;;  %v3142_v58 = vld [vmem:[%s5358_s11 + $0x54] sm:$0xf0] }
 0x560   :  { %v3184_v8 = vld [vmem:[%s5358_s11 + $0x98] sm:$0xf] }
 0x561   :  { %1805 = vmatmul.bf16.vlgmr.msra.gmra.mxu3 %v1747_v2  ;;  %v3433_v2 = vld [vmem:[%s5358_s11 + $0xa0] sm:$0xf0] }
 0x562   :  { %2294 = vmatpush.bf16.msra.mxu3 %v4593_v42  ;;  %v3188_v42 = vld [vmem:[%s5358_s11 + $0xa8] sm:$0xf] }
 0x566   :  { %2295 = vmatpush.bf16.msra.mxu3 %v4599_v60  ;;  %v3435_v60 = vld [vmem:[%s5358_s11 + $0xb0] sm:$0xf0] }
 0x56a   :  { %2296 = vmatpush.bf16.msra.mxu3 %v4605_v40  ;;  %v3434_v40 = vld [vmem:[%s5358_s11 + $0xac] sm:$0xf] }
 0x56e   :  { %2297 = vmatpush.bf16.msra.mxu3 %v4611_v41  ;;  %v4838_v41 = vor.u32 %v3435_v60, %v3188_v42  ;;  %v3145_v42 = vor.u32 %v3422_v56, %v3142_v58  ;;  %v4918_v60 = vor.u32 %v3433_v2, %v3184_v8  ;;  %v3106_v56 = vld [vmem:[%s5358_s11 + $0xc] sm:$0xf0]  ;;  %v3424_v8 = vld [vmem:[%s5358_s11 + $0x58] sm:$0xf0] }
 0x56f   :  { %v3148_v58 = vld [vmem:[%s5358_s11 + $0x50] sm:$0xf]  ;;  %v3109_v2 = vor.u32 %v3413_v5, %v3106_v56  ;;  %v3418_v5 = vld [vmem:[%s5358_s11 + $0x28] sm:$0xf0]  ;;  %v3476_v56 = vld [vmem:[%s5357_s13 + $0x7c] sm:$0xf] }
 0x570   :  { %1944 = vmatpush.bf16.msrb.mxu1 %v4838_v41  ;;  %1973 = vmatpush.bf16.msrb.mxu2 %v4918_v60 }
 0x571   :  { %2129 = vmatmul.bf16.vlgmr.msrb.gmra.mxu3 %v4580_v47 }
 0x572   :  { %2298 = vmatpush.bf16.msra.mxu3 %v4631_v3  ;;  %v3190_v3 = vld [vmem:[%s5358_s11 + $0xb4] sm:$0xf0] }
 0x574   :  { %1974 = vmatpush.bf16.msrb.mxu2 %v4942_v27 }
 0x576   :  { %2299 = vmatpush.bf16.msra.mxu3 %v4648_v22  ;;  %v3193_v22 = vor.u32 %v3434_v40, %v3190_v3  ;;  %v3128_v40 = vld [vmem:[%s5358_s11 + $0x30] sm:$0xf]  ;;  %v3420_v3 = vld [vmem:[%s5358_s11 + $0x38] sm:$0xf0] }
 0x578   :  { %1958 = vmatpush.bf16.msrb.mxu0 %v3193_v22  ;;  %1975 = vmatpush.bf16.msrb.mxu2 %v4966_v24 }
 0x57a   :  { %2300 = vmatpush.bf16.msra.mxu3 %v4666_v59  ;;  %v3176_v59 = vld [vmem:[%s5358_s11 + $0x90] sm:$0xf] }
 0x57c   :  { %1959 = vmatpush.bf16.msrb.mxu0 %v3181_v16 }
 0x57e   :  { %2301 = vmatpush.bf16.msra.mxu3 %v4684_v13  ;;  %v3432_v13 = vld [vmem:[%s5358_s11 + $0x98] sm:$0xf0] }
 0x57f   :  { %v4853_v14 = vor.u32 %v3432_v13, %v3176_v59  ;;  %v4930_v59 = vor.u32 %v3420_v3, %v3128_v40  ;;  %v3130_v13 = vld [vmem:[%s5358_s11 + $0x3c] sm:$0xf0]  ;;  %v3482_v40 = vld [vmem:[%s5357_s13 + $0xac] sm:$0xf]  ;;  %v3286_v3 = vld [vmem:[%s5357_s13 + $0xb4] sm:$0xf0] }
 0x580   :  { %1960 = vmatpush.bf16.msrb.mxu0 %v3169_v26 }
 0x581   :  { %1945 = vmatpush.bf16.msrb.mxu1 %v4853_v14 }
 0x582   :  { %2367 = vmatpush.bf16.msrb.mxu3 %v3193_v22  ;;  %v3419_v22 = vld [vmem:[%s5358_s11 + $0x34] sm:$0xf] }
 0x583   :  { %v3133_v7 = vor.u32 %v3419_v22, %v3130_v13  ;;  %v3292_v22 = vld [vmem:[%s5357_s13 + $0xb0] sm:$0xf]  ;;  %v5001_v13 = vor.u32 %v3482_v40, %v3286_v3  ;;  %v3478_v40 = vld [vmem:[%s5357_s13 + $0x88] sm:$0xf0] }
 0x584   :  { %1961 = vmatpush.bf16.msrb.mxu0 %v3157_v62  ;;  %v5006_v54 = vor.u32 %v3484_v28, %v3292_v22  ;;  %v5064_v28 = vpop.f32.mrf.mxu2 }
 0x585   :  { %1946 = vmatpush.bf16.msrb.mxu1 %v4871_v55  ;;  %5421 = vst [vmem:[#allocation11_spill] sm:$0xff] %v5001_v13 }
 0x586   :  { %2368 = vmatpush.bf16.msrb.mxu3 %v3181_v16  ;;  %v3116_v16 = vld [vmem:[%s5358_s11 + $0x18] sm:$0xf]  ;;  %5422 = vst [vmem:[#allocation2_spill] sm:$0xff] %v5006_v54 }
 0x587   :  { %v4955_v32 = vor.u32 %v3417_v50, %v3116_v16  ;;  %v3421_v16 = vld [vmem:[%s5358_s11 + $0x40] sm:$0xf0]  ;;  %v3479_v50 = vld [vmem:[%s5357_s13 + $0x94] sm:$0xf] }
 0x588   :  { %1962 = vmatpush.bf16.msrb.mxu0 %v3145_v42 }
 0x589   :  { %1947 = vmatpush.bf16.msrb.mxu1 %v4894_v9  ;;  %5419 = vst [vmem:[#allocation7_spill] sm:$0xff] %v4955_v32 }
 0x58a   :  { %2369 = vmatpush.bf16.msrb.mxu3 %v3169_v26  ;;  %v3118_v26 = vld [vmem:[%s5358_s11 + $0x24] sm:$0xf0] }
 0x58b   :  { %v3121_v35 = vor.u32 %v3416_v29, %v3118_v26  ;;  %v3274_v26 = vld [vmem:[%s5357_s13 + $0x9c] sm:$0xf0] }
 0x58c   :  { %1963 = vmatpush.bf16.msrb.mxu0 %v3133_v7 }
 0x58d   :  { %1948 = vmatpush.bf16.msrb.mxu1 %v4907_v18 }
 0x58e   :  { %2370 = vmatpush.bf16.msrb.mxu3 %v3157_v62  ;;  %v3414_v62 = vld [vmem:[%s5358_s11 + $0x8] sm:$0xf0] }
 0x58f   :  { %v4978_v0 = vor.u32 %v3414_v62, %v3104_v38  ;;  %v5034_v38 = vor.u32 %v3481_v34, %v3280_v36  ;;  %v3124_v62 = vld [vmem:[%s5358_s11 + $0x20] sm:$0xf]  ;;  %v3250_v36 = vld [vmem:[%s5357_s13 + $0x6c] sm:$0xf0]  ;;  %v3256_v34 = vld [vmem:[%s5357_s13 + $0x68] sm:$0xf] }
 0x590   :  { %1964 = vmatpush.bf16.msrb.mxu0 %v3121_v35 }
 0x591   :  { %1949 = vmatpush.bf16.msrb.mxu1 %v4930_v59  ;;  %5420 = vst [vmem:[#allocation9_spill] sm:$0xff] %v4978_v0 }
 0x592   :  { %2371 = vmatpush.bf16.msrb.mxu3 %v3145_v42  ;;  %v4990_v42 = vor.u32 %v3424_v8, %v3148_v58  ;;  %5424 = vst [vmem:[#allocation4_spill] sm:$0xff] %v5034_v38  ;;  %v5046_v58 = vor.u32 %v3418_v5, %v3124_v62  ;;  %v3262_v8 = vld [vmem:[%s5357_s13 + $0x84] sm:$0xf0]  ;;  %v3475_v62 = vld [vmem:[%s5357_s13 + $0x70] sm:$0xf0]  ;;  %v5088_v5 = vpop.f32.mrf.mxu0 }
 0x593   :  { %v5059_v3 = vor.u32 %v3476_v56, %v3262_v8  ;;  %v5092_v8 = vor.u32 %v3475_v62, %v3256_v34  ;;  %v3467_v62 = vld [vmem:[%s5357_s13 + $0x34] sm:$0xf] }
 0x594   :  { %1965 = vmatpush.bf16.msrb.mxu0 %v3109_v2  ;;  %1976 = vmatpush.bf16.msrb.mxu2 %v4990_v42 }
 0x595   :  { %1950 = vmatpush.bf16.msrb.mxu1 %v4955_v32  ;;  %5425 = vst [vmem:[#allocation6_spill] sm:$0xff] %v5059_v3 }
 0x596   :  { %2372 = vmatpush.bf16.msrb.mxu3 %v3133_v7  ;;  %v3136_v7 = vld [vmem:[%s5358_s11 + $0x38] sm:$0xf]  ;;  %5428 = vst [vmem:[#allocation12_spill] sm:$0xff] %v5092_v8 }
 0x597   :  { %v5021_v29 = vor.u32 %v3421_v16, %v3136_v7  ;;  %v3112_v7 = vld [vmem:[%s5358_s11 + $0x8] sm:$0xf]  ;;  %v3415_v16 = vld [vmem:[%s5358_s11 + $0x10] sm:$0xf0] }
 0x598   :  { %2149 = vmatpush.bf16.msra.mxu0 %v5006_v54 }
 0x599   :  { %1951 = vmatpush.bf16.msrb.mxu1 %v4978_v0  ;;  %1977 = vmatpush.bf16.msrb.mxu2 %v5021_v29 }
 0x59a   :  { %2373 = vmatpush.bf16.msrb.mxu3 %v3121_v35  ;;  %v5032_v35 = vor.u32 %v3479_v50, %v3274_v26  ;;  %v3473_v50 = vld [vmem:[%s5357_s13 + $0x64] sm:$0xf]  ;;  %v5077_v26 = vor.u32 %v3415_v16, %v3112_v7  ;;  %v3244_v7 = vld [vmem:[%s5357_s13 + $0x50] sm:$0xf]  ;;  %v5147_v54 = vpop.f32.mrf.mxu0 }
 0x59b   :  { %v5090_v56 = vor.u32 %v3473_v50, %v3250_v36  ;;  %v3472_v50 = vld [vmem:[%s5357_s13 + $0x58] sm:$0xf0]  ;;  %v5111_v36 = vpop.f32.mrf.mxu3 }
 0x59c   :  { %5423 = vst [vmem:[#allocation3_spill] sm:$0xff] %v5032_v35  ;;  %2150 = vmatpush.bf16.msra.mxu0 %v5034_v38  ;;  %v5113_v34 = vor.u32 %v3472_v50, %v3244_v7  ;;  %v3469_v7 = vld [vmem:[%s5357_s13 + $0x40] sm:$0xf0]  ;;  %v3464_v50 = vld [vmem:[%s5357_s13 + $0x1c] sm:$0xf] }
 0x59d   :  { %2135 = vmatpush.bf16.msra.mxu1 %v5001_v13  ;;  %1978 = vmatpush.bf16.msrb.mxu2 %v5046_v58  ;;  %5427 = vst [vmem:[#allocation10_spill] sm:$0xff] %v5090_v56 }
 0x59e   :  { %2374 = vmatpush.bf16.msrb.mxu3 %v3109_v2  ;;  %v3268_v2 = vld [vmem:[%s5357_s13 + $0x80] sm:$0xf]  ;;  %5430 = vst [vmem:[#allocation14_spill] sm:$0xff] %v5113_v34 }
 0x59f   :  { %v5061_v22 = vor.u32 %v3478_v40, %v3268_v2  ;;  %v3470_v2 = vld [vmem:[%s5357_s13 + $0x4c] sm:$0xf]  ;;  %v3238_v40 = vld [vmem:[%s5357_s13 + $0x54] sm:$0xf0] }
 0x5a0   :  { %v5106_v16 = vor.u32 %v3470_v2, %v3238_v40  ;;  %v3226_v2 = vld [vmem:[%s5357_s13 + $0x3c] sm:$0xf0]  ;;  %v3232_v40 = vld [vmem:[%s5357_s13 + $0x38] sm:$0xf] }
 0x5a1   :  { %2136 = vmatpush.bf16.msra.mxu1 %v5032_v35  ;;  %5426 = vst [vmem:[#allocation8_spill] sm:$0xff] %v5061_v22  ;;  %2151 = vmatpush.bf16.msra.mxu0 %v5061_v22  ;;  %v5137_v22 = vpop.f32.mrf.mxu2  ;;  %v5139_v38 = vor.u32 %v3469_v7, %v3232_v40  ;;  %v3461_v7 = vld [vmem:[%s5357_s13 + $0x4] sm:$0xf] }
 0x5a2   :  { %1979 = vmatpush.bf16.msrb.mxu2 %v5077_v26  ;;  %5429 = vst [vmem:[#allocation13_spill] sm:$0xff] %v5106_v16 }
 0x5a3   :  { %5432 = vst [vmem:[#allocation16_spill] sm:$0xff] %v5139_v38  ;;  %v5155_v40 = vpop.f32.mrf.mxu3 }
 0x5a5   :  { %2137 = vmatpush.bf16.msra.mxu1 %v5059_v3  ;;  %2152 = vmatpush.bf16.msra.mxu0 %v5092_v8  ;;  %v5126_v8 = vor.u32 %v3467_v62, %v3226_v2  ;;  %v3220_v62 = vld [vmem:[%s5357_s13 + $0x20] sm:$0xf]  ;;  %v3466_v2 = vld [vmem:[%s5357_s13 + $0x28] sm:$0xf0] }
 0x5a7   :  { %5431 = vst [vmem:[#allocation15_spill] sm:$0xff] %v5126_v8 }
 0x5a9   :  { %2138 = vmatpush.bf16.msra.mxu1 %v5090_v56  ;;  %2153 = vmatpush.bf16.msra.mxu0 %v5113_v34  ;;  %v3214_v34 = vld [vmem:[%s5357_s13 + $0x24] sm:$0xf0]  ;;  %v5153_v56 = vor.u32 %v3466_v2, %v3220_v62  ;;  %v3463_v62 = vld [vmem:[%s5357_s13 + $0x10] sm:$0xf0] }
 0x5ab   :  { %5434 = vst [vmem:[#allocation18_spill] sm:$0xff] %v5153_v56 }
 0x5ad   :  { %2139 = vmatpush.bf16.msra.mxu1 %v5106_v16  ;;  %2154 = vmatpush.bf16.msra.mxu0 %v5139_v38  ;;  %v5151_v16 = vor.u32 %v3464_v50, %v3214_v34  ;;  %v3208_v34 = vld [vmem:[%s5357_s13 + $0x8] sm:$0xf] }
 0x5af   :  { %5433 = vst [vmem:[#allocation17_spill] sm:$0xff] %v5151_v16 }
 0x5b1   :  { %2140 = vmatpush.bf16.msra.mxu1 %v5126_v8  ;;  %2155 = vmatpush.bf16.msra.mxu0 %v5153_v56  ;;  %v3202_v8 = vld [vmem:[%s5357_s13 + $0xc] sm:$0xf0]  ;;  %v5173_v56 = vor.u32 %v3463_v62, %v3208_v34 }
 0x5b2   :  { %v5168_v50 = vor.u32 %v3461_v7, %v3202_v8 }
 0x5b5   :  { %2141 = vmatpush.bf16.msra.mxu1 %v5151_v16  ;;  %2156 = vmatpush.bf16.msra.mxu0 %v5173_v56 }
 0x5b9   :  { %2142 = vmatpush.bf16.msra.mxu1 %v5168_v50 }
 0x5be   :  { %v1670_v38 = vpop.f32.mrf.mxu0 }
 0x5c6   :  { %v1672_v48 = vpop.f32.mrf.mxu0 }
 0x5d4   :  { %v1738_v2 = vpop.f32.mrf.mxu2 }
 0x5d5   :  { %v1811_v35 = vadd.f32 %v1738_v2, %v1670_v38 }
 0x5dc   :  { %v1740_v3 = vpop.f32.mrf.mxu2 }
 0x5dd   :  { %v1812_v13 = vadd.f32 %v1740_v3, %v1672_v48  ;;  %v1393_v48 = vld [vmem:[%s5360_s14] sm:$0xff] }
 0x5e4   :  { %v1806_v16 = vpop.f32.mrf.mxu3 }
 0x5e5   :  { %v1813_v8 = vadd.f32 %v1811_v35, %v1806_v16 }
 0x5ec   :  { %v1808_v0 = vpop.f32.mrf.mxu3 }
 0x5ed   :  { %v1814_v7 = vadd.f32 %v1812_v13, %v1808_v0 }
 0x5ef   :  { %v1815_v32 = vpack.c.bf16 %v1814_v7, %v1813_v8 }
 0x5f1   :  { %1952 = vmatmul.bf16.vlgmr.msrb.gmra.mxu1 %v1815_v32  ;;  %1966 = vmatmul.bf16.vlgmr.msrb.gmra.mxu0 %v1815_v32 }
 0x5f2   :  { %1980 = vmatmul.bf16.vlgmr.msrb.gmra.mxu2 %v1815_v32  ;;  %2314 = vmatpush.bf16.msrb.mxu1 %v4636_v6  ;;  %v1397_v32 = vld [vmem:[%s5360_s14 + $0x20] sm:$0xff] }
 0x5f3   :  { %2334 = vmatpush.bf16.msrb.mxu0 %v4643_v11 }
 0x5f4   :  { %v2130_v6 = vpop.f32.mrf.mxu3 }
 0x5f6   :  { %2315 = vmatpush.bf16.msrb.mxu1 %v4653_v46  ;;  %v5223_v46 = vadd.f32 %v5088_v5, %v1393_v48 }
 0x5f7   :  { %2335 = vmatpush.bf16.msrb.mxu0 %v4659_v51 }
 0x5fa   :  { %2316 = vmatpush.bf16.msrb.mxu1 %v4671_v23 }
 0x5fb   :  { %2336 = vmatpush.bf16.msrb.mxu0 %v4679_v12 }
 0x5fe   :  { %2317 = vmatpush.bf16.msrb.mxu1 %v4689_v15 }
 0x5ff   :  { %2337 = vmatpush.bf16.msrb.mxu0 %v4697_v20  ;;  %v1396_v20 = vld [vmem:[%s5360_s14 + $0x18] sm:$0xff] }
 0x601   :  { %2143 = vmatmul.bf16.vlgmr.msra.gmra.mxu1 %v4580_v47  ;;  %2157 = vmatmul.bf16.vlgmr.msra.gmra.mxu0 %v4580_v47  ;;  %v5214_v47 = vld [vmem:[%s5359_s15] sm:$0x7] }
 0x602   :  { %2318 = vmatpush.bf16.msrb.mxu1 %v4702_v53  ;;  %v5220_v11 = vperm.slane %v5214_v47, 0 }
 0x603   :  { %2338 = vmatpush.bf16.msrb.mxu0 %v4709_v61  ;;  %v2132_v61 = vpop.f32.mrf.mxu3 }
 0x604   :  { %v2131_v23 = vadd.f32 %v2130_v6, %v5220_v11 }
 0x606   :  { %2319 = vmatpush.bf16.msrb.mxu1 %v4714_v19  ;;  %v5231_v19 = vadd.f32 %v5147_v54, %v1396_v20  ;;  %v5250_v54 = vadd.f32 %v5137_v22, %v1397_v32  ;;  %v5259_v20 = vperm.slane %v5214_v47, 2 }
 0x607   :  { %2339 = vmatpush.bf16.msrb.mxu0 %v4720_v10 }
 0x60a   :  { %2320 = vmatpush.bf16.msrb.mxu1 %v4726_v52  ;;  %v2133_v52 = vadd.f32 %v2132_v61, %v5220_v11 }
 0x60b   :  { %2340 = vmatpush.bf16.msrb.mxu0 %v4733_v1 }
 0x60e   :  { %2321 = vmatpush.bf16.msrb.mxu1 %v4738_v25 }
 0x60f   :  { %2341 = vmatpush.bf16.msrb.mxu0 %v4745_v57 }
 0x612   :  { %2381 = vmatpush.bf16.msra.mxu1 %v4891_v49 }
 0x613   :  { %2395 = vmatpush.bf16.msra.mxu0 %v4753_v4  ;;  %v1394_v4 = vld [vmem:[%s5360_s14 + $0x8] sm:$0xff] }
 0x616   :  { %2382 = vmatpush.bf16.msra.mxu1 %v4918_v60 }
 0x617   :  { %2396 = vmatpush.bf16.msra.mxu0 %v4763_v43 }
 0x61a   :  { %2383 = vmatpush.bf16.msra.mxu1 %v4942_v27 }
 0x61b   :  { %2397 = vmatpush.bf16.msra.mxu0 %v4772_v45 }
 0x61e   :  { %2384 = vmatpush.bf16.msra.mxu1 %v4966_v24 }
 0x61f   :  { %2398 = vmatpush.bf16.msra.mxu0 %v4781_v37  ;;  %v5239_v37 = vperm.slane %v5214_v47, 1 }
 0x622   :  { %2385 = vmatpush.bf16.msra.mxu1 %v4990_v42 }
 0x623   :  { %2399 = vmatpush.bf16.msra.mxu0 %v4790_v31 }
 0x626   :  { %2386 = vmatpush.bf16.msra.mxu1 %v5021_v29 }
 0x627   :  { %2400 = vmatpush.bf16.msra.mxu0 %v4799_v30  ;;  %v5242_v30 = vadd.f32 %v5064_v28, %v1394_v4  ;;  %v1395_v4 = vld [vmem:[%s5360_s14 + $0x10] sm:$0xff] }
 0x628   :  { %v5271_v32 = vadd.f32 %v5111_v36, %v1395_v4 }
 0x62a   :  { %2387 = vmatpush.bf16.msra.mxu1 %v5046_v58 }
 0x62b   :  { %2401 = vmatpush.bf16.msra.mxu0 %v4808_v33 }
 0x62e   :  { %2388 = vmatpush.bf16.msra.mxu1 %v5077_v26 }
 0x62f   :  { %2402 = vmatpush.bf16.msra.mxu0 %v4817_v21 }
 0x66e   :  { %v1953_v51 = vpop.f32.mrf.mxu1  ;;  %v1967_v1 = vpop.f32.mrf.mxu0 }
 0x66f   :  { %v1954_v12 = vadd.f32 %v1953_v51, %v5223_v46  ;;  %v1968_v21 = vadd.f32 %v1967_v1, %v5242_v30 }
 0x671   :  { %v2163_v15 = vadd.f32 %v2131_v23, %v1954_v12 }
 0x673   :  { %v3294_v53 = vmul.f32 -1.442695, %v2163_v15 }
 0x675   :  { %3528 = vpow2.f32 %v3294_v53  ;;  %v1981_v7 = vpop.f32.mrf.mxu2 }
 0x676   :  { %v1955_v10 = vpop.f32.mrf.mxu1  ;;  %v1969_v60 = vpop.f32.mrf.mxu0 }
 0x677   :  { %v1956_v25 = vadd.f32 %v1955_v10, %v5231_v19  ;;  %v1970_v38 = vadd.f32 %v1969_v60, %v5250_v54 }
 0x679   :  { %v2164_v57 = vadd.f32 %v2133_v52, %v1956_v25 }
 0x67b   :  { %v3529_v43 = vpop.eup %3528  ;;  %v3295_v45 = vmul.f32 -1.442695, %v2164_v57 }
 0x67c   :  { %v2171_v31 = vadd.f32 1.0, %v3529_v43 }
 0x67d   :  { %3530 = vpow2.f32 %v3295_v45 }
 0x67e   :  { %3532 = vrcp.f32 %v2171_v31  ;;  %v2144_v33 = vpop.f32.mrf.mxu1  ;;  %v2158_v16 = vpop.f32.mrf.mxu0  ;;  %v2184_v48 = vand.u32 2147483648, %v2171_v31  ;;  %vm2178_vm4 = vweird.f32 %v2171_v31  ;;  %v2182_v51 = vand.u32 2147483647, %v2171_v31 }
 0x67f   :  { %v2145_v49 = vadd.f32 %v2144_v33, %v5239_v37 }
 0x680   :  { %v2185_v52 = vor.u32 1.1754944e-38, %v2184_v48  ;;  %vm2183_vm8 = vcmp.eq.f32.partialorder %v2182_v51, 8.507059e+37 }
 0x681   :  { %v2203_v27 = vadd.f32 %v2145_v49, %v1968_v21  ;;  %v2159_v21 = vadd.f32 %v2158_v16, %v5259_v20  ;;  %v1398_v49 = vld [vmem:[%s5360_s14 + $0x28] sm:$0xff] }
 0x683   :  { %v3531_v24 = vpop.eup %3530  ;;  %v3296_v0 = vmul.f32 -1.442695, %v2203_v27 }
 0x684   :  { %v3533_v42 = vpop.eup %3532  ;;  %v2172_v13 = vadd.f32 1.0, %v3531_v24 }
 0x685   :  { %3534 = vpow2.f32 %v3296_v0  ;;  %v2174_v29 = vmul.f32 %v3533_v42, %v2171_v31  ;;  %vm2179_vm3 = vweird.f32 %v3533_v42 }
 0x686   :  { %3536 = vrcp.f32 %v2172_v13  ;;  %v2146_v35 = vpop.f32.mrf.mxu1  ;;  %vm5254_vm5 = vmor %vm2178_vm4, %vm2179_vm3  ;;  %v2199_v15 = vand.u32 2147483648, %v2172_v13  ;;  %v2197_v61 = vand.u32 2147483647, %v2172_v13  ;;  %vm2193_vm7 = vweird.f32 %v2172_v13  ;;  %v2160_v47 = vpop.f32.mrf.mxu0 }
 0x687   :  { %v2175_v58 = vsub.f32 1.0, %v2174_v29  ;;  %v2147_v3 = vadd.f32 %v2146_v35, %v5239_v37  ;;  %v2161_v0 = vadd.f32 %v2160_v47, %v5259_v20  ;;  %v5275_v29 = vadd.f32 %v5155_v40, %v1398_v49 }
 0x688   :  { %v2200_v33 = vor.u32 1.1754944e-38, %v2199_v15  ;;  %vm2198_vm10 = vcmp.eq.f32.partialorder %v2197_v61, 8.507059e+37  ;;  %v1982_v35 = vadd.f32 %v1981_v7, %v5271_v32 }
 0x689   :  { %v2204_v28 = vadd.f32 %v2147_v3, %v1970_v38  ;;  %v2176_v26 = vmul.f32 %v3533_v42, %v2175_v58 }
 0x68b   :  { %v3535_v5 = vpop.eup %3534  ;;  %v3297_v34 = vmul.f32 -1.442695, %v2204_v28  ;;  %v2177_v22 = vadd.f32 %v3533_v42, %v2176_v26 }
 0x68c   :  { %v3537_v62 = vpop.eup %3536  ;;  %v2211_v2 = vadd.f32 1.0, %v3535_v5 }
 0x68d   :  { %3538 = vpow2.f32 %v3297_v34  ;;  %v2189_v8 = vmul.f32 %v3537_v62, %v2172_v13  ;;  %vm2194_vm6 = vweird.f32 %v3537_v62  ;;  %v2181_v53 = vsel %vm5254_vm5, %v3533_v42, %v2177_v22  ;;  %v1983_v42 = vpop.f32.mrf.mxu2 }
 0x68e   :  { %3540 = vrcp.f32 %v2211_v2  ;;  %vm2195_vm9 = vmor %vm2193_vm7, %vm2194_vm6  ;;  %v2186_v45 = vsel %vm2183_vm8, %v2185_v52, %v2181_v53  ;;  %v2224_v58 = vand.u32 2147483648, %v2211_v2  ;;  %vm2218_vm12 = vweird.f32 %v2211_v2 }
 0x68f   :  { %v2190_v6 = vsub.f32 1.0, %v2189_v8  ;;  %v2243_v24 = vmul.f32 %v2186_v45, %v2159_v21  ;;  %v2222_v28 = vand.u32 2147483647, %v2211_v2  ;;  %v1984_v36 = vadd.f32 %v1983_v42, %v5275_v29  ;;  %v5448_v42 = vld [vmem:[#allocation4_spill] sm:$0xff] }
 0x690   :  { %v2225_v8 = vor.u32 1.1754944e-38, %v2224_v58 }
 0x691   :  { %v2191_v12 = vmul.f32 %v3537_v62, %v2190_v6  ;;  %v2245_v5 = vadd.f32 %v2243_v24, %v1982_v35  ;;  %vm2223_vm14 = vcmp.eq.f32.partialorder %v2222_v28, 8.507059e+37  ;;  %v5450_v28 = vld [vmem:[#allocation12_spill] sm:$0xff] }
 0x693   :  { %v3539_v10 = vpop.eup %3538  ;;  %v2192_v1 = vadd.f32 %v3537_v62, %v2191_v12 }
 0x694   :  { %v3541_v25 = vpop.eup %3540  ;;  %v2212_v57 = vadd.f32 1.0, %v3539_v10 }
 0x695   :  { %v2214_v43 = vmul.f32 %v3541_v25, %v2211_v2  ;;  %v2196_v31 = vsel %vm2195_vm9, %v3537_v62, %v2192_v1  ;;  %vm2219_vm11 = vweird.f32 %v3541_v25 }
 0x696   :  { %3542 = vrcp.f32 %v2212_v57  ;;  %v2201_v27 = vsel %vm2198_vm10, %v2200_v33, %v2196_v31  ;;  %vm2220_vm13 = vmor %vm2218_vm12, %vm2219_vm11  ;;  %v2239_v48 = vand.u32 2147483648, %v2212_v57  ;;  %v2237_v6 = vand.u32 2147483647, %v2212_v57 }
 0x697   :  { %v2215_v60 = vsub.f32 1.0, %v2214_v43  ;;  %v2244_v38 = vmul.f32 %v2201_v27, %v2161_v0  ;;  %3544 = vtanh.f32 %v2245_v5  ;;  %vm2233_vm1 = vweird.f32 %v2212_v57  ;;  %v5447_v0 = vld [vmem:[#allocation2_spill] sm:$0xff] }
 0x698   :  { %v2240_v23 = vor.u32 1.1754944e-38, %v2239_v48  ;;  %vm2238_vm3 = vcmp.eq.f32.partialorder %v2237_v6, 8.507059e+37  ;;  %v5451_v5 = vld [vmem:[#allocation14_spill] sm:$0xff] }
 0x699   :  { %v2216_v13 = vmul.f32 %v3541_v25, %v2215_v60  ;;  %v2246_v62 = vadd.f32 %v2244_v38, %v1984_v36  ;;  %v5449_v38 = vld [vmem:[#allocation8_spill] sm:$0xff] }
 0x69b   :  { %v2217_v3 = vadd.f32 %v3541_v25, %v2216_v13  ;;  %3546 = vtanh.f32 %v2246_v62 }
 0x69c   :  { %v3543_v26 = vpop.eup %3542 }
 0x69d   :  { %v2229_v16 = vmul.f32 %v3543_v26, %v2212_v57  ;;  %v2221_v34 = vsel %vm2220_vm13, %v3541_v25, %v2217_v3  ;;  %vm2234_vm15 = vweird.f32 %v3543_v26  ;;  %v3545_v15 = vpop.eup %3544 }
 0x69e   :  { %v2226_v40 = vsel %vm2223_vm14, %v2225_v8, %v2221_v34  ;;  %vm2235_vm2 = vmor %vm2233_vm1, %vm2234_vm15  ;;  %v5453_v8 = vld [vmem:[#allocation18_spill] sm:$0xff] }
 0x69f   :  { %v2230_v22 = vsub.f32 1.0, %v2229_v16  ;;  %v2249_v51 = vsub.f32 1.0, %v2226_v40  ;;  %v2253_v25 = vmul.f32 %v2226_v40, %v4574_v17  ;;  %v5437_v17 = vld [vmem:[#allocation7_spill] sm:$0xff]  ;;  %v5452_v16 = vld [vmem:[#allocation16_spill] sm:$0xff] }
 0x6a1   :  { %v2231_v7 = vmul.f32 %v3543_v26, %v2230_v22  ;;  %v2251_v10 = vmul.f32 %v3545_v15, %v2249_v51  ;;  %v3547_v52 = vpop.eup %3546  ;;  %v2531_v51 = vld [vmem:[%s5361_s4] sm:$0xff] }
 0x6a3   :  { %v2232_v2 = vadd.f32 %v3543_v26, %v2231_v7  ;;  %v5281_v43 = vadd.f32 %v2253_v25, %v2251_v10 }
 0x6a5   :  { %v2236_v12 = vsel %vm2235_vm2, %v3543_v26, %v2232_v2 }
 0x6a6   :  { %v2241_v53 = vsel %vm2238_vm3, %v2240_v23, %v2236_v12  ;;  %v3571_v23 = vmov 0  }
 0x6a7   :  { %v2250_v61 = vsub.f32 1.0, %v2241_v53  ;;  %v2254_v4 = vmul.f32 %v2241_v53, %v4576_v63  ;;  %v5438_v63 = vld [vmem:[#allocation9_spill] sm:$0xff]  ;;  %3486 = vset.pattern.permute.xlu0 %v3571_v23  ;;  %v2532_v53 = vld [vmem:[%s5361_s4 + $0x8] sm:$0xff] }
 0x6a8   :  { %2535 = vperm.xlu0 %3486, %v2531_v51  }
 0x6a9   :  { %v2252_v1 = vmul.f32 %v3547_v52, %v2250_v61 }
 0x6ab   :  { %v5283_v45 = vadd.f32 %v2254_v4, %v2252_v1 }
 0x6ad   :  { %v5287_v57 = vpack.c.bf16 %v5283_v45, %v5281_v43 }
 0x6af   :  { %2265 = vmatpush.bf16.msra.mxu2 %v5287_v57 }
 0x6b0   :  { %2540 = vperm.xlu0 %3486, %v2532_v53  }
 0x6b2   :  { %3298 = vmatmul.msk.bf16.vlgmr.msra.gmra.mxu2 %vm285_vm0, %v4586_v39  ;;  %v5440_v39 = vld [vmem:[#allocation3_spill] sm:$0xff] }
 0x6b3   :  { %2353 = vmatpush.bf16.msrb.mxu2 %v4838_v41  ;;  %v5439_v41 = vld [vmem:[#allocation11_spill] sm:$0xff] }
 0x6b7   :  { %2354 = vmatpush.bf16.msrb.mxu2 %v4853_v14  ;;  %v5441_v14 = vld [vmem:[#allocation5_spill] sm:$0xff] }
 0x6bb   :  { %2355 = vmatpush.bf16.msrb.mxu2 %v4871_v55  ;;  %v5442_v55 = vld [vmem:[#allocation6_spill] sm:$0xff] }
 0x6bf   :  { %2356 = vmatpush.bf16.msrb.mxu2 %v4894_v9  ;;  %v5443_v9 = vld [vmem:[#allocation10_spill] sm:$0xff] }
 0x6c2   :  { %3299 = vmatmul.msk.bf16.gmra.mxu2 %vm285_vm0, %v4617_v44  ;;  %v5445_v44 = vld [vmem:[#allocation15_spill] sm:$0xff] }
 0x6c3   :  { %2357 = vmatpush.bf16.msrb.mxu2 %v4907_v18  ;;  %v5444_v18 = vld [vmem:[#allocation13_spill] sm:$0xff] }
 0x6c7   :  { %2358 = vmatpush.bf16.msrb.mxu2 %v4930_v59  ;;  %v5446_v59 = vld [vmem:[#allocation17_spill] sm:$0xff] }
 0x6cb   :  { %2359 = vmatpush.bf16.msrb.mxu2 %v5437_v17 }
 0x6cf   :  { %2360 = vmatpush.bf16.msrb.mxu2 %v5438_v63 }
 0x6d2   :  { %3300 = vmatmul.msk.bf16.gmra.mxu2 %vm285_vm0, %v5441_v14 }
 0x6d3   :  { %2409 = vmatpush.bf16.msra.mxu2 %v5439_v41 }
 0x6d7   :  { %2410 = vmatpush.bf16.msra.mxu2 %v5440_v39 }
 0x6db   :  { %2411 = vmatpush.bf16.msra.mxu2 %v5442_v55 }
 0x6df   :  { %2412 = vmatpush.bf16.msra.mxu2 %v5443_v9 }
 0x6e3   :  { %2413 = vmatpush.bf16.msra.mxu2 %v5444_v18 }
 0x6e7   :  { %2414 = vmatpush.bf16.msra.mxu2 %v5445_v44 }
 0x6eb   :  { %2415 = vmatpush.bf16.msra.mxu2 %v5446_v59 }
 0x6ef   :  { %2416 = vmatpush.bf16.msra.mxu2 %v5168_v50 }
 0x735   :  { %v2267_v47 = vpop.f32.mrf.mxu2 }
 0x736   :  { %v2282_v31 = vpack.c.bf16 %v2267_v47, %v2267_v47 }
 0x738   :  { %v2290_v49 = vunpack.c.l.b16 %v2282_v31 }
 0x73d   :  { %v2269_v33 = vpop.f32.mrf.mxu2 }
 0x73e   :  { %v2283_v21 = vpack.c.bf16 %v2269_v33, %v2269_v33 }
 0x740   :  { %v2291_v60 = vunpack.c.l.b16 %v2283_v21 }
 0x742   :  { %v2292_v27 = vpack.c.b16 %v2291_v60, %v2290_v49 }
 0x744   :  { %2302 = vmatmul.bf16.vlgmr.msra.gmra.mxu3 %v2292_v27 }
 0x745   :  { %v2272_v24 = vpop.f32.mrf.mxu2  ;;  %2423 = vmatpush.bf16.msra.mxu3 %v5447_v0 }
 0x746   :  { %v2284_v13 = vpack.c.bf16 %v2272_v24, %v2272_v24 }
 0x748   :  { %v2310_v3 = vunpack.c.l.b16 %v2284_v13 }
 0x749   :  { %2424 = vmatpush.bf16.msra.mxu3 %v5448_v42 }
 0x74d   :  { %v2274_v35 = vpop.f32.mrf.mxu2  ;;  %2425 = vmatpush.bf16.msra.mxu3 %v5449_v38 }
 0x74e   :  { %v2285_v58 = vpack.c.bf16 %v2274_v35, %v2274_v35 }
 0x750   :  { %v2311_v50 = vunpack.c.l.b16 %v2285_v58 }
 0x751   :  { %2426 = vmatpush.bf16.msra.mxu3 %v5450_v28 }
 0x752   :  { %v2312_v26 = vpack.c.b16 %v2311_v50, %v2310_v3 }
 0x754   :  { %2322 = vmatmul.bf16.vlgmr.msrb.gmra.mxu1 %v2312_v26 }
 0x755   :  { %v2277_v36 = vpop.f32.mrf.mxu2  ;;  %2427 = vmatpush.bf16.msra.mxu3 %v5451_v5 }
 0x756   :  { %v2286_v34 = vpack.c.bf16 %v2277_v36, %v2277_v36 }
 0x758   :  { %v2330_v40 = vunpack.c.l.b16 %v2286_v34 }
 0x759   :  { %2428 = vmatpush.bf16.msra.mxu3 %v5452_v16 }
 0x75d   :  { %v2279_v62 = vpop.f32.mrf.mxu2  ;;  %2429 = vmatpush.bf16.msra.mxu3 %v5453_v8 }
 0x75e   :  { %v2287_v22 = vpack.c.bf16 %v2279_v62, %v2279_v62 }
 0x760   :  { %v2331_v48 = vunpack.c.l.b16 %v2287_v22 }
 0x761   :  { %2430 = vmatpush.bf16.msra.mxu3 %v5173_v56 }
 0x762   :  { %v2332_v7 = vpack.c.b16 %v2331_v48, %v2330_v40 }
 0x764   :  { %2342 = vmatmul.bf16.vlgmr.msrb.gmra.mxu0 %v2332_v7 }
 0x774   :  { %2403 = vmatmul.bf16.vlgmr.msra.gmra.mxu0 %v5287_v57 }
 0x7c7   :  { %v2303_v2 = vpop.f32.mrf.mxu3 }
 0x7cf   :  { %v2305_v56 = vpop.f32.mrf.mxu3 }
 0x7d1   :  { %v2323_v6 = vpop.f32.mrf.mxu1 }
 0x7d2   :  { %v2348_v61 = vadd.f32 %v2323_v6, %v2303_v2 }
 0x7d9   :  { %v2325_v15 = vpop.f32.mrf.mxu1 }
 0x7da   :  { %v2349_v10 = vadd.f32 %v2325_v15, %v2305_v56 }
 0x7e1   :  { %v2343_v12 = vpop.f32.mrf.mxu0 }
 0x7e2   :  { %v2350_v1 = vadd.f32 %v2348_v61, %v2343_v12 }
 0x7e9   :  { %v2345_v52 = vpop.f32.mrf.mxu0 }
 0x7ea   :  { %v2351_v25 = vadd.f32 %v2349_v10, %v2345_v52 }
 0x7ec   :  { %v2352_v4 = vpack.c.bf16 %v2351_v25, %v2350_v1 }
 0x7ee   :  { %2361 = vmatmul.bf16.vlgmr.msrb.gmra.mxu2 %v2352_v4  ;;  %2375 = vmatmul.bf16.vlgmr.msrb.gmra.mxu3 %v2352_v4 }
 0x7ef   :  { %2389 = vmatmul.bf16.vlgmr.msra.gmra.mxu1 %v2352_v4 }
 0x7f1   :  { %v2404_v17 = vpop.f32.mrf.mxu0 }
 0x7f2   :  { %v2405_v41 = vadd.f32 %v2404_v17, %v5220_v11 }
 0x7f9   :  { %v2406_v9 = vpop.f32.mrf.mxu0 }
 0x7fa   :  { %v2407_v44 = vadd.f32 %v2406_v9, %v5220_v11 }
 0x7fe   :  { %2417 = vmatmul.bf16.vlgmr.msra.gmra.mxu2 %v5287_v57  ;;  %2431 = vmatmul.bf16.vlgmr.msra.gmra.mxu3 %v5287_v57 }
 0x86c   :  { %v2390_v40 = vpop.f32.mrf.mxu1 }
 0x871   :  { %v2362_v63 = vpop.f32.mrf.mxu2  ;;  %v2376_v59 = vpop.f32.mrf.mxu3 }
 0x872   :  { %v2363_v39 = vadd.f32 %v2362_v63, %v5223_v46  ;;  %v2377_v60 = vadd.f32 %v2376_v59, %v5242_v30  ;;  %v2391_v63 = vadd.f32 %v2390_v40, %v5271_v32 }
 0x874   :  { %v2437_v14 = vadd.f32 %v2405_v41, %v2363_v39 }
 0x876   :  { %v3301_v55 = vmul.f32 -1.442695, %v2437_v14  ;;  %v2392_v14 = vpop.f32.mrf.mxu1 }
 0x878   :  { %3548 = vpow2.f32 %v3301_v55 }
 0x879   :  { %v2364_v18 = vpop.f32.mrf.mxu2  ;;  %v2378_v27 = vpop.f32.mrf.mxu3 }
 0x87a   :  { %v2365_v47 = vadd.f32 %v2364_v18, %v5231_v19  ;;  %v2379_v38 = vadd.f32 %v2378_v27, %v5250_v54 }
 0x87c   :  { %v2438_v31 = vadd.f32 %v2407_v44, %v2365_v47 }
 0x87e   :  { %v3549_v33 = vpop.eup %3548  ;;  %v3302_v21 = vmul.f32 -1.442695, %v2438_v31  ;;  %v2393_v31 = vadd.f32 %v2392_v14, %v5275_v29 }
 0x87f   :  { %v2445_v57 = vadd.f32 1.0, %v3549_v33 }
 0x880   :  { %3550 = vpow2.f32 %v3302_v21 }
 0x881   :  { %3552 = vrcp.f32 %v2445_v57  ;;  %v2418_v49 = vpop.f32.mrf.mxu2  ;;  %v2432_v26 = vpop.f32.mrf.mxu3  ;;  %v2458_v62 = vand.u32 2147483648, %v2445_v57  ;;  %vm2452_vm4 = vweird.f32 %v2445_v57  ;;  %v2456_v22 = vand.u32 2147483647, %v2445_v57 }
 0x882   :  { %v2419_v46 = vadd.f32 %v2418_v49, %v5239_v37  ;;  %v2433_v53 = vadd.f32 %v2432_v26, %v5259_v20 }
 0x883   :  { %vm2457_vm7 = vcmp.eq.f32.partialorder %v2456_v22, 8.507059e+37 }
 0x884   :  { %v2477_v24 = vadd.f32 %v2419_v46, %v2377_v60 }
 0x886   :  { %v3551_v0 = vpop.eup %3550  ;;  %v3303_v42 = vmul.f32 -1.442695, %v2477_v24 }
 0x887   :  { %v3553_v13 = vpop.eup %3552  ;;  %v2446_v11 = vadd.f32 1.0, %v3551_v0  ;;  %v2536_v0 = vpop.permute.xlu0 %2535 }
 0x888   :  { %3554 = vpow2.f32 %v3303_v42  ;;  %v2448_v35 = vmul.f32 %v3553_v13, %v2445_v57  ;;  %vm2453_vm0 = vweird.f32 %v3553_v13 }
 0x889   :  { %3556 = vrcp.f32 %v2446_v11  ;;  %v2420_v19 = vpop.f32.mrf.mxu2  ;;  %vm2454_vm5 = vmor %vm2452_vm4, %vm2453_vm0  ;;  %v2473_v6 = vand.u32 2147483648, %v2446_v11  ;;  %v2471_v2 = vand.u32 2147483647, %v2446_v11  ;;  %vm2467_vm8 = vweird.f32 %v2446_v11  ;;  %v2434_v61 = vpop.f32.mrf.mxu3 }
 0x88a   :  { %v2449_v58 = vsub.f32 1.0, %v2448_v35  ;;  %v2421_v3 = vadd.f32 %v2420_v19, %v5239_v37  ;;  %v2459_v37 = vor.u32 1.1754944e-38, %v2458_v62  ;;  %v2435_v41 = vadd.f32 %v2434_v61, %v5259_v20 }
 0x88b   :  { %v2474_v52 = vor.u32 1.1754944e-38, %v2473_v6  ;;  %vm2472_vm10 = vcmp.eq.f32.partialorder %v2471_v2, 8.507059e+37 }
 0x88c   :  { %v2450_v50 = vmul.f32 %v3553_v13, %v2449_v58  ;;  %v2478_v28 = vadd.f32 %v2421_v3, %v2379_v38 }
 0x88e   :  { %v3555_v30 = vpop.eup %3554  ;;  %v3304_v36 = vmul.f32 -1.442695, %v2478_v28  ;;  %v2451_v34 = vadd.f32 %v3553_v13, %v2450_v50 }
 0x88f   :  { %v3557_v5 = vpop.eup %3556  ;;  %v2485_v16 = vadd.f32 1.0, %v3555_v30 }
 0x890   :  { %3558 = vpow2.f32 %v3304_v36  ;;  %v2463_v8 = vmul.f32 %v3557_v5, %v2446_v11  ;;  %v2455_v48 = vsel %vm2454_vm5, %v3553_v13, %v2451_v34  ;;  %vm2468_vm6 = vweird.f32 %v3557_v5  ;;  %v2541_v36 = vpop.permute.xlu0 %2540 }
 0x891   :  { %3560 = vrcp.f32 %v2485_v16  ;;  %v2460_v23 = vsel %vm2457_vm7, %v2459_v37, %v2455_v48  ;;  %vm2469_vm9 = vmor %vm2467_vm8, %vm2468_vm6  ;;  %v2498_v39 = vand.u32 2147483648, %v2485_v16  ;;  %v2496_v9 = vand.u32 2147483647, %v2485_v16 }
 0x892   :  { %v2464_v54 = vsub.f32 1.0, %v2463_v8  ;;  %v2517_v25 = vmul.f32 %v2460_v23, %v2433_v53  ;;  %vm2492_vm12 = vweird.f32 %v2485_v16 }
 0x893   :  { %v2499_v33 = vor.u32 1.1754944e-38, %v2498_v39  ;;  %vm2497_vm14 = vcmp.eq.f32.partialorder %v2496_v9, 8.507059e+37 }
 0x894   :  { %v2465_v7 = vmul.f32 %v3557_v5, %v2464_v54  ;;  %v2519_v18 = vadd.f32 %v2517_v25, %v2391_v63 }
 0x896   :  { %v3559_v51 = vpop.eup %3558  ;;  %v2466_v12 = vadd.f32 %v3557_v5, %v2465_v7 }
 0x897   :  { %v3561_v15 = vpop.eup %3560  ;;  %v2486_v56 = vadd.f32 1.0, %v3559_v51 }
 0x898   :  { %v2470_v10 = vsel %vm2469_vm9, %v3557_v5, %v2466_v12  ;;  %v2488_v1 = vmul.f32 %v3561_v15, %v2485_v16  ;;  %vm2493_vm11 = vweird.f32 %v3561_v15 }
 0x899   :  { %3562 = vrcp.f32 %v2486_v56  ;;  %v2475_v4 = vsel %vm2472_vm10, %v2474_v52, %v2470_v10  ;;  %vm2494_vm13 = vmor %vm2492_vm12, %vm2493_vm11  ;;  %v2513_v60 = vand.u32 2147483648, %v2486_v56  ;;  %v2511_v24 = vand.u32 2147483647, %v2486_v56 }
 0x89a   :  { %v2489_v17 = vsub.f32 1.0, %v2488_v1  ;;  %v2518_v44 = vmul.f32 %v2475_v4, %v2435_v41  ;;  %3564 = vtanh.f32 %v2519_v18  ;;  %vm2507_vm1 = vweird.f32 %v2486_v56 }
 0x89b   :  { %v2514_v29 = vor.u32 1.1754944e-38, %v2513_v60  ;;  %vm2512_vm3 = vcmp.eq.f32.partialorder %v2511_v24, 8.507059e+37 }
 0x89c   :  { %v2490_v55 = vmul.f32 %v3561_v15, %v2489_v17  ;;  %v2520_v32 = vadd.f32 %v2518_v44, %v2393_v31 }
 0x89e   :  { %v2491_v59 = vadd.f32 %v3561_v15, %v2490_v55  ;;  %3566 = vtanh.f32 %v2520_v32 }
 0x89f   :  { %v3563_v47 = vpop.eup %3562 }
 0x8a0   :  { %v2495_v21 = vsel %vm2494_vm13, %v3561_v15, %v2491_v59  ;;  %v2503_v57 = vmul.f32 %v3563_v47, %v2486_v56  ;;  %vm2508_vm15 = vweird.f32 %v3563_v47  ;;  %v3565_v13 = vpop.eup %3564 }
 0x8a1   :  { %v2500_v20 = vsel %vm2497_vm14, %v2499_v33, %v2495_v21  ;;  %vm2509_vm2 = vmor %vm2507_vm1, %vm2508_vm15 }
 0x8a2   :  { %v2504_v49 = vsub.f32 1.0, %v2503_v57  ;;  %v2523_v46 = vsub.f32 1.0, %v2500_v20  ;;  %v2527_v38 = vmul.f32 %v2500_v20, %v5281_v43 }
 0x8a4   :  { %v2505_v27 = vmul.f32 %v3563_v47, %v2504_v49  ;;  %v2525_v11 = vmul.f32 %v3565_v13, %v2523_v46  ;;  %v3567_v3 = vpop.eup %3566 }
 0x8a6   :  { %v2506_v42 = vadd.f32 %v3563_v47, %v2505_v27  ;;  %v2529_v50 = vadd.f32 %v2527_v38, %v2525_v11 }
 0x8a8   :  { %v2510_v35 = vsel %vm2509_vm2, %v3563_v47, %v2506_v42  ;;  %v2543_v5 = vmul.f32 %v2536_v0, %v2529_v50 }
 0x8a9   :  { %v2515_v19 = vsel %vm2512_vm3, %v2514_v29, %v2510_v35 }
 0x8aa   :  { %v2524_v58 = vsub.f32 1.0, %v2515_v19  ;;  %v2528_v30 = vmul.f32 %v2515_v19, %v5283_v45 }
 0x8ac   :  { %v2526_v28 = vmul.f32 %v3567_v3, %v2524_v58 }
 0x8ae   :  { %v2530_v26 = vadd.f32 %v2528_v30, %v2526_v28 }
 0x8b0   :  { %v2544_v16 = vmul.f32 %v2541_v36, %v2530_v26 }
 0x8b2   :  { %v2545_v34 = vadd.f32 %v2544_v16, %v2543_v5 }
 0x8b4   :  { %v2546_v62 = vrot.slane %v2545_v34, 4 }
 0x8b6   :  { %v2547_v8 = vadd.f32 %v2546_v62, %v2545_v34 }
 0x8b8   :  { %v2548_v22 = vrot.slane %v2547_v8, 2 }
 0x8ba   :  { %v2549_v40 = vadd.f32 %v2548_v22, %v2547_v8 }
 0x8bc   :  { %v2550_v54 = vrot.slane %v2549_v40, 1 }
 0x8be   :  { %v2551_v48 = vadd.f32 %v2550_v54, %v2549_v40 }
 0x8c0   :  { %2552 = vst [vmem:[%s5362_s16] sm:$0x1] %v2551_v48 }

</bundles_post_ra>
